<compile_context>
chip_gen: v7x
topology: tpu7x:2x2x1
jax: 0.10.0
libtpu: 0.0.40
codegen_flags: <defaults>
</compile_context>

<pallas_src>
import functools

import jax
import jax.numpy as jnp
from jax import lax
from jax.experimental import pallas as pl
from jax.experimental.pallas import tpu as pltpu

EPS = 1e-5
_FUSED_MAX_M = 8192                 # single fused block up to M=8192 (~16 MiB VMEM worst case)
_TILE_M = 2048                      # lane tile for the large-M two-pass path
_VMEM_LIMIT = 32 * 1024 * 1024      # > v5e 16 MiB scoped default, < v7x 64 MiB physical


# ---------------------------------------------------------------------------
# Path 1 (M <= _FUSED_MAX_M): fused mul+conv+BN, pipelined over the Cin contraction
# ---------------------------------------------------------------------------
def _fused_kernel(x_ref, w_ref, g_ref, b_ref, o_ref, acc_ref):
    # x_ref: (TK, M) f32    w_ref: (Cout, TK) bf16 (SE scale pre-folded)
    # g_ref/b_ref: (Cout,1) o_ref: (Cout, M)  acc_ref: (Cout, M) f32 scratch
    k = pl.program_id(0)

    @pl.when(k == 0)
    def _():
        acc_ref[...] = jnp.zeros_like(acc_ref)

    acc_ref[...] += jnp.dot(w_ref[...],
                            x_ref[...].astype(jnp.bfloat16),
                            preferred_element_type=jnp.float32)

    @pl.when(k == pl.num_programs(0) - 1)
    def _():
        y = acc_ref[...]
        mean = jnp.mean(y, axis=1, keepdims=True)              # (Cout, 1)
        d = y - mean
        var = jnp.mean(d * d, axis=1, keepdims=True)           # biased var (BN training)
        scale = g_ref[...] * lax.rsqrt(var + EPS)              # fold gamma into one scale
        bias = b_ref[...] - mean * scale                       # fold beta/mean into one bias
        o_ref[...] = (y * scale + bias).astype(o_ref.dtype)    # one FMA per element


# ---------------------------------------------------------------------------
# Path 2 (large M): M-tiled matmul + masked per-tile BN partials, then apply pass
# ---------------------------------------------------------------------------
def _mm_stats_kernel(x_ref, w_ref, y_ref, sum_ref, sq_ref, *, m_total, tile_m):
    # x_ref: (Cin, TM) f32  w_ref: (Cout, Cin) bf16
    # y_ref: (Cout, TM) bf16 intermediate   sum_ref/sq_ref: (1, Cout, 1) f32 partials
    j = pl.program_id(0)
    y = jnp.dot(w_ref[...], x_ref[...].astype(jnp.bfloat16),
                preferred_element_type=jnp.float32)             # (Cout, TM) f32
    y_ref[...] = y.astype(y_ref.dtype)                          # bf16 HBM intermediate
    # Mask the ragged last tile's out-of-bounds columns out of the statistics.
    col = j * tile_m + lax.broadcasted_iota(jnp.int32, y.shape, 1)
    ym = jnp.where(col < m_total, y, 0.0)
    sum_ref[0, :, :] = jnp.sum(ym, axis=1, keepdims=True)
    sq_ref[0, :, :] = jnp.sum(ym * ym, axis=1, keepdims=True)


def _bn_apply_kernel(y_ref, sc_ref, bi_ref, o_ref):
    # y_ref: (Cout, TM) bf16   sc_ref/bi_ref: (Cout, 1) f32   o_ref: (Cout, TM)
    y = y_ref[...].astype(jnp.float32)
    o_ref[...] = (y * sc_ref[...] + bi_ref[...]).astype(o_ref.dtype)


# ---------------------------------------------------------------------------
# Wrapper
# ---------------------------------------------------------------------------
def fused_mul_conv_bn(x_nchw, scale_nc11, weight_oihw, gamma, beta,
                      *, force_tiled=False):
    """x_nchw: (1, Cin, H, W); scale_nc11: (1, Cin, 1, 1); weight: (Cout, Cin, 1, 1)."""
    N, Cin, H, W = x_nchw.shape
    Cout = weight_oihw.shape[0]
    assert N == 1, "kernel specialized to the module's batch size (N=1)"
    M = H * W

    # Channel-major views (reshape-only for N=1).
    x2d = x_nchw.reshape(Cin, M)                                    # (Cin, M)
    # Fold the SE per-channel scale into the 1x1 conv weight: W @ diag(s) @ x.
    w_scaled = (weight_oihw.reshape(Cout, Cin).astype(jnp.float32)
                * scale_nc11.reshape(1, Cin).astype(jnp.float32))   # one-time 64x384 op
    w_bf16 = w_scaled.astype(jnp.bfloat16)
    g2d = gamma.reshape(Cout, 1).astype(jnp.float32)
    b2d = beta.reshape(Cout, 1).astype(jnp.float32)

    if (M <= _FUSED_MAX_M) and not force_tiled:
        TK = 128 if Cin % 128 == 0 else Cin      # Cin contraction blocks (pipelined DMA)
        nk = Cin // TK
        out2d = pl.pallas_call(
            _fused_kernel,
            out_shape=jax.ShapeDtypeStruct((Cout, M), x_nchw.dtype),
            grid=(nk,),
            in_specs=[
                pl.BlockSpec((TK, M), lambda k: (k, 0)),
                pl.BlockSpec((Cout, TK), lambda k: (0, k)),
                pl.BlockSpec((Cout, 1), lambda k: (0, 0)),
                pl.BlockSpec((Cout, 1), lambda k: (0, 0)),
            ],
            out_specs=pl.BlockSpec((Cout, M), lambda k: (0, 0)),
            scratch_shapes=[pltpu.VMEM((Cout, M), jnp.float32)],
            compiler_params=pltpu.CompilerParams(
                dimension_semantics=("arbitrary",),
                vmem_limit_bytes=_VMEM_LIMIT),
        )(x2d, w_bf16, g2d, b2d)
        return out2d.reshape(N, Cout, H, W)

    # ---------------- tiled two-pass path (very large M) ----------------
    TM = min(_TILE_M, M)
    nmt = pl.cdiv(M, TM)

    y2d, psum, psq = pl.pallas_call(
        functools.partial(_mm_stats_kernel, m_total=M, tile_m=TM),
        out_shape=(
            jax.ShapeDtypeStruct((Cout, M), jnp.bfloat16),      # bf16 intermediate
            jax.ShapeDtypeStruct((nmt, Cout, 1), jnp.float32),
            jax.ShapeDtypeStruct((nmt, Cout, 1), jnp.float32),
        ),
        grid=(nmt,),
        in_specs=[
            pl.BlockSpec((Cin, TM), lambda j: (0, j)),
            pl.BlockSpec((Cout, Cin), lambda j: (0, 0)),
        ],
        out_specs=(
            pl.BlockSpec((Cout, TM), lambda j: (0, j)),
            pl.BlockSpec((1, Cout, 1), lambda j: (j, 0, 0)),
            pl.BlockSpec((1, Cout, 1), lambda j: (j, 0, 0)),
        ),
        compiler_params=pltpu.CompilerParams(
            dimension_semantics=("parallel",),
            vmem_limit_bytes=_VMEM_LIMIT),
    )(x2d, w_bf16)

    # Tiny (Cout-sized) cross-tile combine + fold BN into one scale/bias per channel.
    tot = jnp.sum(psum[:, :, 0], axis=0)                        # (Cout,)
    tot_sq = jnp.sum(psq[:, :, 0], axis=0)
    mean = tot / M
    var = jnp.maximum(tot_sq / M - mean * mean, 0.0)            # biased variance
    inv = lax.rsqrt(var + EPS)
    g32 = gamma.astype(jnp.float32)
    scale_bn = (g32 * inv).reshape(Cout, 1)
    bias_bn = (beta.astype(jnp.float32) - mean * g32 * inv).reshape(Cout, 1)

    out2d = pl.pallas_call(
        _bn_apply_kernel,
        out_shape=jax.ShapeDtypeStruct((Cout, M), x_nchw.dtype),
        grid=(nmt,),
        in_specs=[
            pl.BlockSpec((Cout, TM), lambda j: (0, j)),
            pl.BlockSpec((Cout, 1), lambda j: (0, 0)),
            pl.BlockSpec((Cout, 1), lambda j: (0, 0)),
        ],
        out_specs=pl.BlockSpec((Cout, TM), lambda j: (0, j)),
        compiler_params=pltpu.CompilerParams(
            dimension_semantics=("parallel",),
            vmem_limit_bytes=_VMEM_LIMIT),
    )(y2d, scale_bn, bias_bn)

    return out2d.reshape(N, Cout, H, W)


if __name__ == "__main__":
    key = jax.random.PRNGKey(0)
    k1, k2, k3, k4, k5 = jax.random.split(key, 5)

    Cin, Cout = 384, 64
    weight = (jax.random.normal(k3, (Cout, Cin, 1, 1), dtype=jnp.float32)
              * (1.0 / jnp.sqrt(Cin)))
    gamma = 1.0 + 0.1 * jax.random.normal(k4, (Cout,), dtype=jnp.float32)
    beta = 0.1 * jax.random.normal(k5, (Cout,), dtype=jnp.float32)

    def reference(x, s):
        x141 = x * s
        x142 = jnp.einsum("nchw,oc->nohw", x141, weight.reshape(Cout, Cin))
        m = jnp.mean(x142, axis=(0, 2, 3), keepdims=True)
        v = jnp.mean((x142 - m) ** 2, axis=(0, 2, 3), keepdims=True)
        return (x142 - m) * lax.rsqrt(v + EPS) * gamma.reshape(1, Cout, 1, 1) \
            + beta.reshape(1, Cout, 1, 1)

    ok = True
    # (28, 28): the module's exact spatial size -> pipelined fused path.
    # (56, 56): larger case, now also fused (raised threshold).
    # (56, 56, force_tiled): exercises the two-pass path incl. ragged-tile masking.
    for (H, W, forced) in [(28, 28, False), (56, 56, False), (56, 56, True)]:
        x135 = jax.random.normal(k1, (1, Cin, H, W), dtype=jnp.float32)
        x140 = jax.random.normal(k2, (1, Cin, 1, 1), dtype=jnp.float32)

        out = jax.block_until_ready(
            fused_mul_conv_bn(x135, x140, weight, gamma, beta, force_tiled=forced))
        ref = reference(x135, x140)

        err = float(jnp.max(jnp.abs(out - ref)))
        ok = ok and (out.shape == (1, Cout, H, W)) and (err < 5e-2)

    if ok:
        print("KERNEL_OK")
</pallas_src>

<mosaic_0001>
module attributes {stable_mosaic.version = 11 : i64} {
  func.func @_fused_kernel(%arg0: i32, %arg1: memref<128x784xf32, #tpu.memory_space<vmem>>, %arg2: memref<64x128xbf16, #tpu.memory_space<vmem>>, %arg3: memref<64x1xf32, #tpu.memory_space<vmem>>, %arg4: memref<64x1xf32, #tpu.memory_space<vmem>>, %arg5: memref<64x784xf32, #tpu.memory_space<vmem>>, %arg6: memref<64x784xf32, #tpu.memory_space<vmem>>) attributes {dimension_semantics = [#tpu.dimension_semantics<arbitrary>], iteration_bounds = array<i64: 3>, scalar_prefetch = 0 : i64, scratch_operands = 1 : i64, tpu.core_type = #tpu.core_type<tc>, window_params = [{transform_indices = @transform_0, window_bounds = array<i64: 128, 784>}, {transform_indices = @transform_1, window_bounds = array<i64: 64, 128>}, {pipeline_mode = #tpu.pipeline_mode<synchronous>, transform_indices = @transform_2, window_bounds = array<i64: 64, 1>}, {pipeline_mode = #tpu.pipeline_mode<synchronous>, transform_indices = @transform_3, window_bounds = array<i64: 64, 1>}, {pipeline_mode = #tpu.pipeline_mode<synchronous>, transform_indices = @transform_4, window_bounds = array<i64: 64, 784>}]} {
    %c0_i32 = arith.constant 0 : i32
    %0 = arith.cmpi eq, %arg0, %c0_i32 : i32
    %1 = arith.extui %0 : i1 to i32
    %c0_i32_0 = arith.constant 0 : i32
    %2 = arith.cmpi ne, %1, %c0_i32_0 : i32
    scf.if %2 {
      %cst_9 = arith.constant 0.000000e+00 : f32
      %13 = vector.broadcast %cst_9 : f32 to vector<64x784xf32>
      %c0_10 = arith.constant 0 : index
      %c0_11 = arith.constant 0 : index
      %14 = vector.load %arg6[%c0_10, %c0_11] : memref<64x784xf32, #tpu.memory_space<vmem>>, vector<64x784xf32>
      tpu.vector_store %arg6[%c0_10, %c0_11], %13 {strides = array<i32>} : memref<64x784xf32, #tpu.memory_space<vmem>>, vector<64x784xf32>,
    } else {
    }
    %c0 = arith.constant 0 : index
    %c0_1 = arith.constant 0 : index
    %3 = vector.load %arg6[%c0, %c0_1] : memref<64x784xf32, #tpu.memory_space<vmem>>, vector<64x784xf32>
    %c0_2 = arith.constant 0 : index
    %c0_3 = arith.constant 0 : index
    %4 = vector.load %arg2[%c0_2, %c0_3] : memref<64x128xbf16, #tpu.memory_space<vmem>>, vector<64x128xbf16>
    %c0_4 = arith.constant 0 : index
    %c0_5 = arith.constant 0 : index
    %5 = vector.load %arg1[%c0_4, %c0_5] : memref<128x784xf32, #tpu.memory_space<vmem>>, vector<128x784xf32>
    %6 = arith.truncf %5 : vector<128x784xf32> to vector<128x784xbf16>
    %cst = arith.constant dense<0.000000e+00> : vector<64x784xf32>
    %7 = tpu.matmul %4, %6, %cst {dimension_numbers = #tpu.dot_dimension_numbers<[1], [0], [0], [1], [0, 0, 1, 1], [], []>} : vector<64x128xbf16>, vector<128x784xbf16>, vector<64x784xf32> -> vector<64x784xf32>
    %8 = arith.addf %3, %7 : vector<64x784xf32>
    %c0_6 = arith.constant 0 : index
    %c0_7 = arith.constant 0 : index
    %9 = vector.load %arg6[%c0_6, %c0_7] : memref<64x784xf32, #tpu.memory_space<vmem>>, vector<64x784xf32>
    tpu.vector_store %arg6[%c0_6, %c0_7], %8 {strides = array<i32>} : memref<64x784xf32, #tpu.memory_space<vmem>>, vector<64x784xf32>,
    %c2_i32 = arith.constant 2 : i32
    %10 = arith.cmpi eq, %arg0, %c2_i32 : i32
    %11 = arith.extui %10 : i1 to i32
    %c0_i32_8 = arith.constant 0 : i32
    %12 = arith.cmpi ne, %11, %c0_i32_8 : i32
    scf.if %12 {
      %c0_9 = arith.constant 0 : index
      %c0_10 = arith.constant 0 : index
      %13 = vector.load %arg6[%c0_9, %c0_10] : memref<64x784xf32, #tpu.memory_space<vmem>>, vector<64x784xf32>
      %cst_11 = arith.constant dense<0.000000e+00> : vector<64xf32>
      %14 = vector.multi_reduction <add>, %13, %cst_11 [1] : vector<64x784xf32> to vector<64xf32>
      %15 = vector.shape_cast %14 : vector<64xf32> to vector<64x1xf32>
      %cst_12 = arith.constant 7.840000e+02 : f32
      %16 = vector.broadcast %cst_12 : f32 to vector<64x1xf32>
      %17 = arith.divf %15, %16 : vector<64x1xf32>
      %18 = vector.broadcast %17 : vector<64x1xf32> to vector<64x784xf32>
      %19 = arith.subf %13, %18 : vector<64x784xf32>
      %20 = arith.mulf %19, %19 : vector<64x784xf32>
      %cst_13 = arith.constant dense<0.000000e+00> : vector<64xf32>
      %21 = vector.multi_reduction <add>, %20, %cst_13 [1] : vector<64x784xf32> to vector<64xf32>
      %22 = vector.shape_cast %21 : vector<64xf32> to vector<64x1xf32>
      %cst_14 = arith.constant 7.840000e+02 : f32
      %23 = vector.broadcast %cst_14 : f32 to vector<64x1xf32>
      %24 = arith.divf %22, %23 : vector<64x1xf32>
      %c0_15 = arith.constant 0 : index
      %c0_16 = arith.constant 0 : index
      %25 = vector.load %arg3[%c0_15, %c0_16] : memref<64x1xf32, #tpu.memory_space<vmem>>, vector<64x1xf32>
      %cst_17 = arith.constant 9.99999974E-6 : f32
      %26 = vector.broadcast %cst_17 : f32 to vector<64x1xf32>
      %27 = arith.addf %24, %26 : vector<64x1xf32>
      %28 = math.rsqrt %27 : vector<64x1xf32>
      %29 = arith.mulf %25, %28 : vector<64x1xf32>
      %c0_18 = arith.constant 0 : index
      %c0_19 = arith.constant 0 : index
      %30 = vector.load %arg4[%c0_18, %c0_19] : memref<64x1xf32, #tpu.memory_space<vmem>>, vector<64x1xf32>
      %31 = arith.mulf %17, %29 : vector<64x1xf32>
      %32 = arith.subf %30, %31 : vector<64x1xf32>
      %33 = vector.broadcast %29 : vector<64x1xf32> to vector<64x784xf32>
      %34 = arith.mulf %13, %33 : vector<64x784xf32>
      %35 = vector.broadcast %32 : vector<64x1xf32> to vector<64x784xf32>
      %36 = arith.addf %34, %35 : vector<64x784xf32>
      %c0_20 = arith.constant 0 : index
      %c0_21 = arith.constant 0 : index
      %37 = vector.load %arg5[%c0_20, %c0_21] : memref<64x784xf32, #tpu.memory_space<vmem>>, vector<64x784xf32>
      tpu.vector_store %arg5[%c0_20, %c0_21], %36 {strides = array<i32>} : memref<64x784xf32, #tpu.memory_space<vmem>>, vector<64x784xf32>,
    } else {
    }
    return
  }
  func.func @transform_0(%arg0: i32) -> (i32, i32) {
    %c0_i32 = arith.constant 0 : i32
    %c0_i32_0 = arith.constant 0 : i32
    return %arg0, %c0_i32 : i32, i32
  }
  func.func @transform_1(%arg0: i32) -> (i32, i32) {
    %c0_i32 = arith.constant 0 : i32
    %c0_i32_0 = arith.constant 0 : i32
    return %c0_i32, %arg0 : i32, i32
  }
  func.func @transform_2(%arg0: i32) -> (i32, i32) {
    %c0_i32 = arith.constant 0 : i32
    %c0_i32_0 = arith.constant 0 : i32
    %c0_i32_1 = arith.constant 0 : i32
    return %c0_i32, %c0_i32_0 : i32, i32
  }
  func.func @transform_3(%arg0: i32) -> (i32, i32) {
    %c0_i32 = arith.constant 0 : i32
    %c0_i32_0 = arith.constant 0 : i32
    %c0_i32_1 = arith.constant 0 : i32
    return %c0_i32, %c0_i32_0 : i32, i32
  }
  func.func @transform_4(%arg0: i32) -> (i32, i32) {
    %c0_i32 = arith.constant 0 : i32
    %c0_i32_0 = arith.constant 0 : i32
    %c0_i32_1 = arith.constant 0 : i32
    return %c0_i32, %c0_i32_0 : i32, i32
  }
}

</mosaic_0001>

<bundles_post_ra>
// kernel: tpu_custom_call.1
= control target key start
LH: loop header
LB: loop body
LE: loop exit
PB: predicated region body
PF: predicated region fallthrough
CT: control target
= control target key end

     0   :  { %9 = vsyncpa [#allocation5], 0  ;;  %s1895_s15 = smov 0   ;;  %s1897_s16 = smov 0   ;;  %s2607_s0 = inlined_call_operand.vmem [shape: f32[384,784], index: 0, kind: input, shape index: {}]   ;;  %s2608_s1 = inlined_call_operand.vmem [shape: bf16[64,384], index: 1, kind: input, shape index: {}]   ;;  %s2609_s2 = inlined_call_operand.vmem [shape: f32[64,1], index: 2, kind: input, shape index: {}]   ;;  %s2610_s3 = inlined_call_operand.vmem [shape: f32[64,1], index: 3, kind: input, shape index: {}]   ;;  %s2611_s4 = inlined_call_operand.hbm [shape: f32[64,784], index: 4, kind: output, shape index: {}]  }
   0x1   :  { %s1899_s17 = smov 0  }
   0x2 LB: > { %s1911_s18 = sadd.s32 4294967295, %s1862_s17   ;;  %s1914_s19 = sadd.s32 1, %s1862_s17   ;;  %s1862_s17 = sphi %s1899_s17, %s2733_s17   ;;  %s1858_s16 = sphi %s1897_s16, %s2732_s16   ;;  %s1854_s15 = sphi %s1895_s15, %s2731_s15  }
   0x3   : > { %s45_s20 = ssub.s32 %s1862_s17, %s1914_s19  ;;  %s48_s21 = sadd.s32 1, %s1858_s16 }
   0x4   : > { %p46_p0 = scmp.eq.s32.totalorder %s45_s20, 0  ;;  %p55_p1 = scmp.ne.s32.totalorder %s1858_s16, %s1854_s15 }
   0x5   : > { %p56_p2 = scmp.eq.s32.totalorder %s1862_s17, 0  ;;  %p1698_p4 = scmp.ge.s32.totalorder %s1862_s17, 3 }
   0x6   : > { %s1923_s22 = scalar_select %p46_p0, %s1858_s16, %s48_s21  }
   0x7   : > { %p57_p3 = por %p56_p2, %p55_p1  ;;  %150 = sbr.rel (%p1698_p4) target bundleno = 23 (0x17), region = 24 }
   0xe   : > { %163 = sbr.rel (!%p57_p3) target bundleno = 23 (0x17), region = 32  ;;  %s165_s23 = sand.u32 (%p57_p3), 1, %s1858_s16  }
   0xf   : > { %s1700_s24 = sshll.u32 (%p57_p3), %s1862_s17, 2  ;;  %s1699_s25 = sshll.u32 (%p57_p3), %s165_s23, 5 }
  0x10   : > { %s169_s28 = scalar_lea.vmem (%p57_p3), %s2608_s1, %s1700_s24  ;;  %s167_s29 = scalar_lea.vmem (%p57_p3), [#allocation3], %s1699_s25 }
  0x11   : > { %v185_v0 = vld [vmem:[%s169_s28] sm:$0xf] (%p57_p3)  ;;  %v187_v1 = vld [vmem:[%s169_s28 + $0xc] sm:$0xf] (%p57_p3)  ;;  %v189_v2 = vld [vmem:[%s169_s28 + $0x18] sm:$0xf] (%p57_p3) }
  0x12   : > { %186 = vst [vmem:[%s167_s29] sm:$0xf] (%p57_p3), %v185_v0  ;;  %188 = vst [vmem:[%s167_s29 + $0x4] sm:$0xf] (%p57_p3), %v187_v1  ;;  %v191_v3 = vld [vmem:[%s169_s28 + $0x24] sm:$0xf] (%p57_p3) }
  0x13   : > { %v193_v4 = vld [vmem:[%s169_s28 + $0x30] sm:$0xf] (%p57_p3)  ;;  %190 = vst [vmem:[%s167_s29 + $0x8] sm:$0xf] (%p57_p3), %v189_v2  ;;  %192 = vst [vmem:[%s167_s29 + $0xc] sm:$0xf] (%p57_p3), %v191_v3 }
  0x14   : > { %194 = vst [vmem:[%s167_s29 + $0x10] sm:$0xf] (%p57_p3), %v193_v4  ;;  %v195_v5 = vld [vmem:[%s169_s28 + $0x3c] sm:$0xf] (%p57_p3)  ;;  %v197_v6 = vld [vmem:[%s169_s28 + $0x48] sm:$0xf] (%p57_p3) }
  0x15   : > { %v199_v7 = vld [vmem:[%s169_s28 + $0x54] sm:$0xf]  ;;  %196 = vst [vmem:[%s167_s29 + $0x14] sm:$0xf] %v195_v5  ;;  %198 = vst [vmem:[%s167_s29 + $0x18] sm:$0xf] %v197_v6 }
  0x16   : > { %200 = vst [vmem:[%s167_s29 + $0x1c] sm:$0xf] %v199_v7 }
  0x17 PF: > { %p1701_p5 = scmp.ge.s32.totalorder %s1862_s17, 1  ;;  %p238_p6 = scmp.lt.s32.totalorder %s1862_s17, 4 }
  0x19   : > { %p239_p7 = pnand %p1701_p5, %p238_p6 }
  0x1a   : > { %s245_s30 = sand.u32 (!%p239_p7), 1, %s1854_s15   ;;  %s1703_s5 = sshll.u32 (!%p239_p7), %s1911_s18, 4 }
  0x1b   : > { %242 = sbr.rel (%p239_p7) target bundleno = 919 (0x397), region = 73  ;;  %s1702_s6 = sshll.u32 (!%p239_p7), %s245_s30, 5 }
  0x1c   : > { %p272_p8 = scmp.lt.s32.totalorder (!%p239_p7), %s1703_s5, 47  ;;  %s1940_s11 = scalar_lea.vmem (!%p239_p7), [#allocation3], %s1702_s6 }
  0x1d   : > { %p1705_p9 = scmp.ne.s32.totalorder (!%p239_p7), %s1911_s18, 0 }
  0x22   : > { %s2735_s5 = smov (!%p272_p8, %s1703_s5), 47  ;;  %282 = sbr.rel (%p1705_p9) target bundleno = 64 (0x40), region = 81 }
  0x23   : > { %s1751_s7 = smul.u32 56, %s2735_s5  ;;  %vm289_vm0 = vcmask (!%p1705_p9), 130048   ;;  %v1864_v8 = vmov (!%p1705_p9), 0.0  }
  0x24   : > { %283 = vst [vmem:[#allocation2] sm:$0xff] (!%p1705_p9), %v1864_v8  ;;  %284 = vst [vmem:[#allocation2 + $0x8] sm:$0xff] (!%p1705_p9), %v1864_v8 }
  0x25   : > { %s1938_s10 = scalar_lea.vmem %s2607_s0, %s1751_s7  ;;  %285 = vst [vmem:[#allocation2 + $0x10] sm:$0xff] (!%p1705_p9), %v1864_v8  ;;  %286 = vst [vmem:[#allocation2 + $0x18] sm:$0xff] (!%p1705_p9), %v1864_v8 }
  0x26   : > { %287 = vst [vmem:[#allocation2 + $0x20] sm:$0xff] (!%p1705_p9), %v1864_v8  ;;  %288 = vst [vmem:[#allocation2 + $0x28] sm:$0xff] (!%p1705_p9), %v1864_v8 }
  0x27   : > { %291 = vst [vmem:[#allocation2 + $0x38] sm:$0xff] (!%p1705_p9), %v1864_v8  ;;  %292 = vst [vmem:[#allocation2 + $0x40] sm:$0xff] (!%p1705_p9), %v1864_v8 }
  0x28   : > { %293 = vst [vmem:[#allocation2 + $0x48] sm:$0xff] (!%p1705_p9), %v1864_v8  ;;  %294 = vst [vmem:[#allocation2 + $0x50] sm:$0xff] (!%p1705_p9), %v1864_v8 }
  0x29   : > { %295 = vst [vmem:[#allocation2 + $0x58] sm:$0xff] %v1864_v8  ;;  %296 = vst [vmem:[#allocation2 + $0x60] sm:$0xff] %v1864_v8 }
  0x2a   : > { %298 = vst [vmem:[#allocation2 + $0x70] sm:$0xff] %v1864_v8  ;;  %299 = vst [vmem:[#allocation2 + $0x78] sm:$0xff] %v1864_v8 }
  0x2b   : > { %300 = vst [vmem:[#allocation2 + $0x80] sm:$0xff] %v1864_v8  ;;  %301 = vst [vmem:[#allocation2 + $0x88] sm:$0xff] %v1864_v8 }
  0x2c   : > { %302 = vst [vmem:[#allocation2 + $0x90] sm:$0xff] %v1864_v8  ;;  %303 = vst [vmem:[#allocation2 + $0x98] sm:$0xff] %v1864_v8 }
  0x2d   : > { %305 = vst [vmem:[#allocation2 + $0xa8] sm:$0xff] %v1864_v8  ;;  %306 = vst [vmem:[#allocation2 + $0xb0] sm:$0xff] %v1864_v8 }
  0x2e   : > { %307 = vst [vmem:[#allocation2 + $0xb8] sm:$0xff] %v1864_v8  ;;  %308 = vst [vmem:[#allocation2 + $0xc0] sm:$0xff] %v1864_v8 }
  0x2f   : > { %309 = vst [vmem:[#allocation2 + $0xc8] sm:$0xff] %v1864_v8  ;;  %310 = vst [vmem:[#allocation2 + $0xd0] sm:$0xff] %v1864_v8 }
  0x30   : > { %312 = vst [vmem:[#allocation2 + $0xe0] sm:$0xff] %v1864_v8  ;;  %313 = vst [vmem:[#allocation2 + $0xe8] sm:$0xff] %v1864_v8 }
  0x31   : > { %314 = vst [vmem:[#allocation2 + $0xf0] sm:$0xff] %v1864_v8  ;;  %315 = vst [vmem:[#allocation2 + $0xf8] sm:$0xff] %v1864_v8 }
  0x32   : > { %316 = vst [vmem:[#allocation2 + $0x100] sm:$0xff] %v1864_v8  ;;  %317 = vst [vmem:[#allocation2 + $0x108] sm:$0xff] %v1864_v8 }
  0x33   : > { %319 = vst [vmem:[#allocation2 + $0x118] sm:$0xff] %v1864_v8  ;;  %320 = vst [vmem:[#allocation2 + $0x120] sm:$0xff] %v1864_v8 }
  0x34   : > { %321 = vst [vmem:[#allocation2 + $0x128] sm:$0xff] %v1864_v8  ;;  %322 = vst [vmem:[#allocation2 + $0x130] sm:$0xff] %v1864_v8 }
  0x35   : > { %323 = vst [vmem:[#allocation2 + $0x138] sm:$0xff] %v1864_v8  ;;  %324 = vst [vmem:[#allocation2 + $0x140] sm:$0xff] %v1864_v8 }
  0x36   : > { %326 = vst [vmem:[#allocation2 + $0x150] sm:$0xff] %v1864_v8  ;;  %327 = vst [vmem:[#allocation2 + $0x158] sm:$0xff] %v1864_v8 }
  0x37   : > { %328 = vst [vmem:[#allocation2 + $0x160] sm:$0xff] %v1864_v8  ;;  %329 = vst [vmem:[#allocation2 + $0x168] sm:$0xff] %v1864_v8 }
  0x38   : > { %330 = vst [vmem:[#allocation2 + $0x170] sm:$0xff] %v1864_v8  ;;  %331 = vst [vmem:[#allocation2 + $0x178] sm:$0xff] %v1864_v8 }
  0x39   : > { %333 = vst [vmem:[#allocation2 + $0x188] sm:$0xff] %v1864_v8  ;;  %334 = vst [vmem:[#allocation2 + $0x190] sm:$0xff] %v1864_v8 }
  0x3a   : > { %335 = vst [vmem:[#allocation2 + $0x198] sm:$0xff] %v1864_v8  ;;  %336 = vst [vmem:[#allocation2 + $0x1a0] sm:$0xff] %v1864_v8 }
  0x3b   : > { %337 = vst [vmem:[#allocation2 + $0x1a8] sm:$0xff] %v1864_v8  ;;  %338 = vst [vmem:[#allocation2 + $0x1b0] sm:$0xff] %v1864_v8 }
  0x3c   : > { %290 = vst.msk [vmem:[#allocation2 + $0x30] sm:$0xff] %vm289_vm0, %v1864_v8  ;;  %297 = vst.msk [vmem:[#allocation2 + $0x68] sm:$0xff] %vm289_vm0, %v1864_v8 }
  0x3d   : > { %304 = vst.msk [vmem:[#allocation2 + $0xa0] sm:$0xff] %vm289_vm0, %v1864_v8  ;;  %311 = vst.msk [vmem:[#allocation2 + $0xd8] sm:$0xff] %vm289_vm0, %v1864_v8 }
  0x3e   : > { %318 = vst.msk [vmem:[#allocation2 + $0x110] sm:$0xff] %vm289_vm0, %v1864_v8  ;;  %325 = vst.msk [vmem:[#allocation2 + $0x148] sm:$0xff] %vm289_vm0, %v1864_v8 }
  0x3f   : > { %332 = vst.msk [vmem:[#allocation2 + $0x180] sm:$0xff] %vm289_vm0, %v1864_v8  ;;  %339 = vst.msk [vmem:[#allocation2 + $0x1b8] sm:$0xff] %vm289_vm0, %v1864_v8 }
  0x40 PF: > { %v405_v9 = vld [vmem:[%s1938_s10 + $0x8] sm:$0xff]  ;;  %v412_v10 = vld [vmem:[%s1938_s10 + $0x40] sm:$0xff]  ;;  %v411_v13 = vld [vmem:[%s1938_s10 + $0x38] sm:$0xff]  ;;  %v1865_v16 = vmov 0   ;;  %vm942_vm1 = vcmask 130048   ;;  %p1710_p10 = scmp.ne.s32.totalorder %s1911_s18, 2 }
  0x41   : > { %v404_v11 = vld [vmem:[%s1938_s10] sm:$0xff]  ;;  %v517_v12 = vpack.c.bf16 %v412_v10, %v405_v9  ;;  %v419_v14 = vld [vmem:[%s1938_s10 + $0x78] sm:$0xff]  ;;  %v426_v15 = vld [vmem:[%s1938_s10 + $0xb0] sm:$0xff]  ;;  %628 = vmatprep.mubr.bf16.mxu0 %v1865_v16  ;;  %701 = vmatprep.mubr.bf16.mxu1 %v1865_v16 }
  0x42   : > { %v516_v17 = vpack.c.bf16 %v411_v13, %v404_v11  ;;  %v524_v18 = vpack.c.bf16 %v426_v15, %v419_v14  ;;  %v418_v19 = vld [vmem:[%s1938_s10 + $0x70] sm:$0xff]  ;;  %v425_v20 = vld [vmem:[%s1938_s10 + $0xa8] sm:$0xff]  ;;  %v440_v22 = vld [vmem:[%s1938_s10 + $0x120] sm:$0xff] }
  0x43   : > { %v433_v21 = vld [vmem:[%s1938_s10 + $0xe8] sm:$0xff]  ;;  %596 = vmatprep.subr.bf16.mxu0 %v517_v12  ;;  %v523_v23 = vpack.c.bf16 %v425_v20, %v418_v19  ;;  %v432_v24 = vld [vmem:[%s1938_s10 + $0xe0] sm:$0xff]  ;;  %v439_v25 = vld [vmem:[%s1938_s10 + $0x118] sm:$0xff] }
  0x44   : > { %597 = vmatpush1.bf16.msra.mxu0 %v516_v17  ;;  %v531_v26 = vpack.c.bf16 %v440_v22, %v433_v21  ;;  %v447_v27 = vld [vmem:[%s1938_s10 + $0x158] sm:$0xff]  ;;  %v414_v29 = vld [vmem:[%s1938_s10 + $0x50] sm:$0xff]  ;;  %v413_v33 = vld [vmem:[%s1938_s10 + $0x48] sm:$0xff]  ;;  %v530_v35 = vpack.c.bf16 %v439_v25, %v432_v24 }
  0x45   : > { %598 = vmatprep.subr.bf16.mxu0 %v524_v18  ;;  %v407_v28 = vld [vmem:[%s1938_s10 + $0x18] sm:$0xff]  ;;  %v454_v30 = vld [vmem:[%s1938_s10 + $0x190] sm:$0xff]  ;;  %v421_v36 = vld [vmem:[%s1938_s10 + $0x88] sm:$0xff] }
  0x46   : > { %v519_v31 = vpack.c.bf16 %v414_v29, %v407_v28  ;;  %v406_v32 = vld [vmem:[%s1938_s10 + $0x10] sm:$0xff]  ;;  %v428_v37 = vld [vmem:[%s1938_s10 + $0xc0] sm:$0xff]  ;;  %v538_v39 = vpack.c.bf16 %v454_v30, %v447_v27  ;;  %v453_v41 = vld [vmem:[%s1938_s10 + $0x188] sm:$0xff] }
  0x47   : > { %v518_v34 = vpack.c.bf16 %v413_v33, %v406_v32  ;;  %v420_v38 = vld [vmem:[%s1938_s10 + $0x80] sm:$0xff]  ;;  %v446_v40 = vld [vmem:[%s1938_s10 + $0x150] sm:$0xff]  ;;  %v526_v42 = vpack.c.bf16 %v428_v37, %v421_v36  ;;  %v427_v43 = vld [vmem:[%s1938_s10 + $0xb8] sm:$0xff] }
  0x48   : > { %599 = vmatpush1.bf16.msra.mxu0 %v523_v23  ;;  %669 = vmatprep.subr.bf16.mxu1 %v519_v31  ;;  %v461_v44 = vld [vmem:[%s1938_s10 + $0x1c8] sm:$0xff]  ;;  %v468_v45 = vld [vmem:[%s1938_s10 + $0x200] sm:$0xff]  ;;  %v525_v46 = vpack.c.bf16 %v427_v43, %v420_v38  ;;  %v435_v47 = vld [vmem:[%s1938_s10 + $0xf8] sm:$0xff]  ;;  %v537_v51 = vpack.c.bf16 %v453_v41, %v446_v40 }
  0x49   : > { %600 = vmatprep.subr.bf16.mxu0 %v531_v26  ;;  %670 = vmatpush1.bf16.msra.mxu1 %v518_v34  ;;  %v442_v48 = vld [vmem:[%s1938_s10 + $0x130] sm:$0xff]  ;;  %v441_v50 = vld [vmem:[%s1938_s10 + $0x128] sm:$0xff]  ;;  %v460_v52 = vld [vmem:[%s1938_s10 + $0x1c0] sm:$0xff]  ;;  %v545_v55 = vpack.c.bf16 %v468_v45, %v461_v44 }
  0x4a   : > { %671 = vmatprep.subr.bf16.mxu1 %v526_v42  ;;  %v434_v49 = vld [vmem:[%s1938_s10 + $0xf0] sm:$0xff]  ;;  %v467_v53 = vld [vmem:[%s1938_s10 + $0x1f8] sm:$0xff]  ;;  %v533_v54 = vpack.c.bf16 %v442_v48, %v435_v47  ;;  %v449_v58 = vld [vmem:[%s1938_s10 + $0x168] sm:$0xff] }
  0x4b   : > { %v475_v56 = vld [vmem:[%s1938_s10 + $0x238] sm:$0xff]  ;;  %v532_v57 = vpack.c.bf16 %v441_v50, %v434_v49  ;;  %v456_v59 = vld [vmem:[%s1938_s10 + $0x1a0] sm:$0xff]  ;;  %v482_v60 = vld [vmem:[%s1938_s10 + $0x270] sm:$0xff]  ;;  %v544_v1 = vpack.c.bf16 %v467_v53, %v460_v52 }
  0x4c   : > { %601 = vmatpush1.bf16.msra.mxu0 %v530_v35  ;;  %v540_v61 = vpack.c.bf16 %v456_v59, %v449_v58  ;;  %v448_v62 = vld [vmem:[%s1938_s10 + $0x160] sm:$0xff]  ;;  %v455_v63 = vld [vmem:[%s1938_s10 + $0x198] sm:$0xff]  ;;  %v474_v0 = vld [vmem:[%s1938_s10 + $0x230] sm:$0xff]  ;;  %v552_v5 = vpack.c.bf16 %v482_v60, %v475_v56 }
  0x4d   : > { %602 = vmatprep.subr.bf16.mxu0 %v538_v39  ;;  %672 = vmatpush1.bf16.msra.mxu1 %v525_v46  ;;  %v481_v2 = vld [vmem:[%s1938_s10 + $0x268] sm:$0xff]  ;;  %v463_v3 = vld [vmem:[%s1938_s10 + $0x1d8] sm:$0xff]  ;;  %v470_v4 = vld [vmem:[%s1938_s10 + $0x210] sm:$0xff]  ;;  %v539_v7 = vpack.c.bf16 %v455_v63, %v448_v62 }
  0x4e   : > { %673 = vmatprep.subr.bf16.mxu1 %v533_v54  ;;  %v489_v6 = vld [vmem:[%s1938_s10 + $0x2a8] sm:$0xff]  ;;  %v496_v8 = vld [vmem:[%s1938_s10 + $0x2e0] sm:$0xff]  ;;  %v547_v9 = vpack.c.bf16 %v470_v4, %v463_v3  ;;  %v462_v10 = vld [vmem:[%s1938_s10 + $0x1d0] sm:$0xff]  ;;  %v551_v13 = vpack.c.bf16 %v481_v2, %v474_v0 }
  0x4f   : > { %v469_v11 = vld [vmem:[%s1938_s10 + $0x208] sm:$0xff]  ;;  %v484_v14 = vld [vmem:[%s1938_s10 + $0x280] sm:$0xff]  ;;  %v559_v15 = vpack.c.bf16 %v496_v8, %v489_v6  ;;  %v495_v18 = vld [vmem:[%s1938_s10 + $0x2d8] sm:$0xff] }
  0x50   : > { %603 = vmatpush1.bf16.msra.mxu0 %v537_v51  ;;  %v477_v12 = vld [vmem:[%s1938_s10 + $0x248] sm:$0xff]  ;;  %v488_v17 = vld [vmem:[%s1938_s10 + $0x2a0] sm:$0xff]  ;;  %v503_v19 = vld [vmem:[%s1938_s10 + $0x318] sm:$0xff]  ;;  %v546_v20 = vpack.c.bf16 %v469_v11, %v462_v10 }
  0x51   : > { %604 = vmatprep.subr.bf16.mxu0 %v545_v55  ;;  %674 = vmatpush1.bf16.msra.mxu1 %v532_v57  ;;  %v510_v21 = vld [vmem:[%s1938_s10 + $0x350] sm:$0xff]  ;;  %v554_v22 = vpack.c.bf16 %v484_v14, %v477_v12  ;;  %v476_v23 = vld [vmem:[%s1938_s10 + $0x240] sm:$0xff]  ;;  %v483_v24 = vld [vmem:[%s1938_s10 + $0x278] sm:$0xff]  ;;  %v558_v27 = vpack.c.bf16 %v495_v18, %v488_v17 }
  0x52   : > { %675 = vmatprep.subr.bf16.mxu1 %v540_v61  ;;  %v491_v25 = vld [vmem:[%s1938_s10 + $0x2b8] sm:$0xff]  ;;  %v498_v26 = vld [vmem:[%s1938_s10 + $0x2f0] sm:$0xff]  ;;  %v566_v28 = vpack.c.bf16 %v510_v21, %v503_v19  ;;  %v509_v30 = vld [vmem:[%s1938_s10 + $0x348] sm:$0xff]  ;;  %v553_v32 = vpack.c.bf16 %v483_v24, %v476_v23 }
  0x53   : > { %v502_v29 = vld [vmem:[%s1938_s10 + $0x310] sm:$0xff]  ;;  %v409_v31 = vld [vmem:[%s1938_s10 + $0x28] sm:$0xff]  ;;  %v416_v33 = vld [vmem:[%s1938_s10 + $0x60] sm:$0xff]  ;;  %v561_v34 = vpack.c.bf16 %v498_v26, %v491_v25 }
  0x54   : > { %605 = vmatpush1.bf16.msra.mxu0 %v544_v1  ;;  %v490_v35 = vld [vmem:[%s1938_s10 + $0x2b0] sm:$0xff]  ;;  %v497_v36 = vld [vmem:[%s1938_s10 + $0x2e8] sm:$0xff]  ;;  %v512_v38 = vld [vmem:[%s1938_s10 + $0x360] sm:$0xff]  ;;  %v565_v39 = vpack.c.bf16 %v509_v30, %v502_v29  ;;  %v521_v42 = vpack.c.bf16 %v416_v33, %v409_v31 }
  0x55   : > { %606 = vmatprep.subr.bf16.mxu0 %v552_v5  ;;  %676 = vmatpush1.bf16.msra.mxu1 %v539_v7  ;;  %v505_v37 = vld [vmem:[%s1938_s10 + $0x328] sm:$0xff]  ;;  %v408_v40 = vld [vmem:[%s1938_s10 + $0x20] sm:$0xff]  ;;  %v415_v41 = vld [vmem:[%s1938_s10 + $0x58] sm:$0xff]  ;;  %v560_v44 = vpack.c.bf16 %v497_v36, %v490_v35 }
  0x56   : > { %677 = vmatprep.subr.bf16.mxu1 %v547_v9  ;;  %v423_v43 = vld [vmem:[%s1938_s10 + $0x98] sm:$0xff]  ;;  %v430_v45 = vld [vmem:[%s1938_s10 + $0xd0] sm:$0xff]  ;;  %v568_v46 = vpack.c.bf16 %v512_v38, %v505_v37  ;;  %v504_v47 = vld [vmem:[%s1938_s10 + $0x320] sm:$0xff]  ;;  %v520_v52 = vpack.c.bf16 %v415_v41, %v408_v40 }
  0x57   : > { %v511_v48 = vld [vmem:[%s1938_s10 + $0x358] sm:$0xff]  ;;  %v2024_v49 = vld [vmem:[%s1940_s11] sm:$0xff]   ;;  %v410_v50 = vld [vmem:[%s1938_s10 + $0x30] sm:$0xff]  ;;  %v528_v53 = vpack.c.bf16 %v430_v45, %v423_v43 }
  0x58   : > { %607 = vmatpush1.bf16.msra.mxu0 %v551_v13  ;;  %v417_v51 = vld [vmem:[%s1938_s10 + $0x68] sm:$0xff]  ;;  %v422_v54 = vld [vmem:[%s1938_s10 + $0x90] sm:$0xff]  ;;  %v567_v57 = vpack.c.bf16 %v511_v48, %v504_v47  ;;  %v444_v58 = vld [vmem:[%s1938_s10 + $0x140] sm:$0xff] }
  0x59   : > { %608 = vmatprep.subr.bf16.mxu0 %v559_v15  ;;  %678 = vmatpush1.bf16.msra.mxu1 %v546_v20  ;;  %v429_v55 = vld [vmem:[%s1938_s10 + $0xc8] sm:$0xff]  ;;  %v522_v59 = vpack.c.bf16 %v417_v51, %v410_v50  ;;  %v424_v60 = vld [vmem:[%s1938_s10 + $0xa0] sm:$0xff]  ;;  %v431_v61 = vld [vmem:[%s1938_s10 + $0xd8] sm:$0xff] }
  0x5a   : > { %679 = vmatprep.subr.bf16.mxu1 %v554_v22  ;;  %v437_v56 = vld [vmem:[%s1938_s10 + $0x108] sm:$0xff]  ;;  %v527_v62 = vpack.c.bf16 %v429_v55, %v422_v54  ;;  %v436_v0 = vld [vmem:[%s1938_s10 + $0x100] sm:$0xff]  ;;  %v443_v1 = vld [vmem:[%s1938_s10 + $0x138] sm:$0xff]  ;;  %v529_v4 = vpack.c.bf16 %v431_v61, %v424_v60 }
  0x5b   : > { %v535_v63 = vpack.c.bf16 %v444_v58, %v437_v56  ;;  %v451_v2 = vld [vmem:[%s1938_s10 + $0x178] sm:$0xff]  ;;  %v458_v3 = vld [vmem:[%s1938_s10 + $0x1b0] sm:$0xff]  ;;  %v2041_v5 = vld [vmem:[%s1940_s11 + $0x8] sm:$0xff]   ;;  %v534_v8 = vpack.c.bf16 %v443_v1, %v436_v0 }
  0x5c   : > { %609 = vmatpush1.bf16.msra.mxu0 %v558_v27  ;;  %v438_v6 = vld [vmem:[%s1938_s10 + $0x110] sm:$0xff]  ;;  %v445_v7 = vld [vmem:[%s1938_s10 + $0x148] sm:$0xff]  ;;  %v542_v9 = vpack.c.bf16 %v458_v3, %v451_v2  ;;  %v472_v13 = vld [vmem:[%s1938_s10 + $0x220] sm:$0xff] }
  0x5d   : > { %610 = vmatprep.subr.bf16.mxu0 %v566_v28  ;;  %680 = vmatpush1.bf16.msra.mxu1 %v553_v32  ;;  %v450_v10 = vld [vmem:[%s1938_s10 + $0x170] sm:$0xff]  ;;  %v457_v11 = vld [vmem:[%s1938_s10 + $0x1a8] sm:$0xff]  ;;  %v536_v14 = vpack.c.bf16 %v445_v7, %v438_v6  ;;  %v452_v15 = vld [vmem:[%s1938_s10 + $0x180] sm:$0xff] }
  0x5e   : > { %681 = vmatprep.subr.bf16.mxu1 %v561_v34  ;;  %v465_v12 = vld [vmem:[%s1938_s10 + $0x1e8] sm:$0xff]  ;;  %v459_v17 = vld [vmem:[%s1938_s10 + $0x1b8] sm:$0xff]  ;;  %v541_v18 = vpack.c.bf16 %v457_v11, %v450_v10  ;;  %v464_v20 = vld [vmem:[%s1938_s10 + $0x1e0] sm:$0xff] }
  0x5f   : > { %v549_v19 = vpack.c.bf16 %v472_v13, %v465_v12  ;;  %v471_v21 = vld [vmem:[%s1938_s10 + $0x218] sm:$0xff]  ;;  %v486_v23 = vld [vmem:[%s1938_s10 + $0x290] sm:$0xff]  ;;  %v543_v24 = vpack.c.bf16 %v459_v17, %v452_v15  ;;  %v473_v27 = vld [vmem:[%s1938_s10 + $0x228] sm:$0xff] }
  0x60   : > { %611 = vmatpush1.bf16.msra.mxu0 %v565_v39  ;;  %v479_v22 = vld [vmem:[%s1938_s10 + $0x258] sm:$0xff]  ;;  %v2060_v25 = vld [vmem:[%s1940_s11 + $0x10] sm:$0xff]   ;;  %v548_v28 = vpack.c.bf16 %v471_v21, %v464_v20  ;;  %v485_v31 = vld [vmem:[%s1938_s10 + $0x288] sm:$0xff] }
  0x61   : > { %742 = vmatprep.subr.bf16.mxu0 %v521_v42  ;;  %682 = vmatpush1.bf16.msra.mxu1 %v560_v44  ;;  %v466_v26 = vld [vmem:[%s1938_s10 + $0x1f0] sm:$0xff]  ;;  %v556_v29 = vpack.c.bf16 %v486_v23, %v479_v22  ;;  %v493_v32 = vld [vmem:[%s1938_s10 + $0x2c8] sm:$0xff]  ;;  %v500_v33 = vld [vmem:[%s1938_s10 + $0x300] sm:$0xff] }
  0x62   : > { %683 = vmatprep.subr.bf16.mxu1 %v568_v46  ;;  %v478_v30 = vld [vmem:[%s1938_s10 + $0x250] sm:$0xff]  ;;  %v550_v34 = vpack.c.bf16 %v473_v27, %v466_v26  ;;  %v480_v35 = vld [vmem:[%s1938_s10 + $0x260] sm:$0xff]  ;;  %v487_v36 = vld [vmem:[%s1938_s10 + $0x298] sm:$0xff]  ;;  %v563_v38 = vpack.c.bf16 %v500_v33, %v493_v32 }
  0x63   : > { %629 = vmatmul.mubr.bf16.vlgmr.msra.gmra.mrb[0].mxu0 %v2024_v49  ;;  %v555_v37 = vpack.c.bf16 %v485_v31, %v478_v30  ;;  %v492_v39 = vld [vmem:[%s1938_s10 + $0x2c0] sm:$0xff]  ;;  %v499_v40 = vld [vmem:[%s1938_s10 + $0x2f8] sm:$0xff]  ;;  %v514_v42 = vld [vmem:[%s1938_s10 + $0x370] sm:$0xff]  ;;  %v557_v43 = vpack.c.bf16 %v487_v36, %v480_v35 }
  0x64   : > { %743 = vmatpush1.bf16.msra.mxu0 %v520_v52  ;;  %638 = vmatprep.mubr.bf16.mxu0 %v1865_v16  ;;  %v507_v41 = vld [vmem:[%s1938_s10 + $0x338] sm:$0xff]  ;;  %v494_v45 = vld [vmem:[%s1938_s10 + $0x2d0] sm:$0xff]  ;;  %v501_v46 = vld [vmem:[%s1938_s10 + $0x308] sm:$0xff]  ;;  %v562_v47 = vpack.c.bf16 %v499_v40, %v492_v39 }
  0x65   : > { %744 = vmatprep.subr.bf16.mxu0 %v528_v53  ;;  %684 = vmatpush1.bf16.msra.mxu1 %v567_v57  ;;  %v1791_v44 = vld [vmem:[%s1940_s11 + $0x18] sm:$0xff]   ;;  %v570_v48 = vpack.c.bf16 %v514_v42, %v507_v41  ;;  %v506_v50 = vld [vmem:[%s1938_s10 + $0x330] sm:$0xff]  ;;  %v513_v51 = vld [vmem:[%s1938_s10 + $0x368] sm:$0xff]  ;;  %v564_v52 = vpack.c.bf16 %v501_v46, %v494_v45 }
  0x66   : > { %1727 = vmatprep.subr.bf16.mxu1 %v522_v59  ;;  %v508_v53 = vld [vmem:[%s1938_s10 + $0x340] sm:$0xff]  ;;  %v515_v54 = vld [vmem:[%s1938_s10 + $0x378] sm:$0xff]  ;;  %v569_v55 = vpack.c.bf16 %v513_v51, %v506_v50  ;;  %v341_v58 = vld [vmem:[#allocation2 + $0x8] sm:$0xff] }
  0x67   : > { %v571_v56 = vpack.c.bf16 %v515_v54, %v508_v53  ;;  %v340_v57 = vld [vmem:[#allocation2] sm:$0xff]  ;;  %v342_v3 = vld [vmem:[#allocation2 + $0x10] sm:$0xff]  ;;  %v355_v11 = vld [vmem:[#allocation2 + $0x78] sm:$0xff] }
  0x68   : > { %745 = vmatpush1.bf16.msra.mxu0 %v527_v62  ;;  %702 = vmatmul.mubr.bf16.vlgmr.msra.gmra.mrb[0].mxu1 %v2024_v49  ;;  %v348_v62 = vld [vmem:[#allocation2 + $0x40] sm:$0xff]  ;;  %v354_v7 = vld [vmem:[#allocation2 + $0x70] sm:$0xff]  ;;  %v361_v15 = vld [vmem:[#allocation2 + $0xa8] sm:$0xff] }
  0x69   : > { %746 = vmatprep.subr.bf16.mxu0 %v535_v63  ;;  %1728 = vmatpush3.bf16.msra.mxu1 %v522_v59  ;;  %v347_v59 = vld [vmem:[#allocation2 + $0x38] sm:$0xff]  ;;  %v350_v10 = vld [vmem:[#allocation2 + $0x50] sm:$0xff]  ;;  %v356_v27 = vld [vmem:[#allocation2 + $0x80] sm:$0xff] }
  0x6a   : > { %1729 = vmatprep.subr.bf16.mxu1 %v529_v4  ;;  %711 = vmatprep.mubr.bf16.mxu1 %v1865_v16  ;;  %v362_v21 = vld [vmem:[#allocation2 + $0xb0] sm:$0xff]  ;;  %v363_v31 = vld [vmem:[#allocation2 + $0xb8] sm:$0xff]  ;;  %v368_v32 = vld [vmem:[#allocation2 + $0xe0] sm:$0xff] }
  0x6b   : > { %639 = vmatmul.mubr.bf16.gmra.mrb[4].mxu0 %v2041_v5  ;;  %v364_v35 = vld [vmem:[#allocation2 + $0xc0] sm:$0xff]  ;;  %v369_v36 = vld [vmem:[#allocation2 + $0xe8] sm:$0xff]  ;;  %v375_v40 = vld [vmem:[#allocation2 + $0x118] sm:$0xff] }
  0x6c   : > { %747 = vmatpush1.bf16.msra.mxu0 %v534_v8  ;;  %648 = vmatprep.mubr.bf16.mxu0 %v1865_v16  ;;  %v376_v45 = vld [vmem:[#allocation2 + $0x120] sm:$0xff]  ;;  %v371_v54 = vld [vmem:[#allocation2 + $0xf8] sm:$0xff] }
  0x6d   : > { %748 = vmatprep.subr.bf16.mxu0 %v542_v9  ;;  %1730 = vmatpush3.bf16.msra.mxu1 %v529_v4 }
  0x6e   : > { %1731 = vmatprep.subr.bf16.mxu1 %v536_v14 }
  0x70   : > { %749 = vmatpush1.bf16.msra.mxu0 %v541_v18  ;;  %712 = vmatmul.mubr.bf16.gmra.mrb[4].mxu1 %v2041_v5 }
  0x71   : > { %750 = vmatprep.subr.bf16.mxu0 %v549_v19  ;;  %1732 = vmatpush3.bf16.msra.mxu1 %v536_v14 }
  0x72   : > { %1733 = vmatprep.subr.bf16.mxu1 %v543_v24  ;;  %721 = vmatprep.mubr.bf16.mxu1 %v1865_v16 }
  0x73   : > { %649 = vmatmul.mubr.bf16.gmra.mrb[8].mxu0 %v2060_v25 }
  0x74   : > { %751 = vmatpush1.bf16.msra.mxu0 %v548_v28  ;;  %658 = vmatprep.mubr.bf16.mxu0 %v1865_v16 }
  0x75   : > { %752 = vmatprep.subr.bf16.mxu0 %v556_v29  ;;  %1734 = vmatpush3.bf16.msra.mxu1 %v543_v24  ;;  %v357_v29 = vld [vmem:[#allocation2 + $0x88] sm:$0xff] }
  0x76   : > { %1735 = vmatprep.subr.bf16.mxu1 %v550_v34 }
  0x78   : > { %753 = vmatpush1.bf16.msra.mxu0 %v555_v37  ;;  %722 = vmatmul.mubr.bf16.gmra.mrb[8].mxu1 %v2060_v25 }
  0x79   : > { %754 = vmatprep.subr.bf16.mxu0 %v563_v38  ;;  %1736 = vmatpush3.bf16.msra.mxu1 %v550_v34 }
  0x7a   : > { %1737 = vmatprep.subr.bf16.mxu1 %v557_v43  ;;  %731 = vmatprep.mubr.bf16.mxu1 %v1865_v16 }
  0x7b   : > { %659 = vmatmul.mubr.bf16.gmra.mrb[12].mxu0 %v1791_v44 }
  0x7c   : > { %755 = vmatpush1.bf16.msra.mxu0 %v562_v47  ;;  %774 = vmatprep.mubr.bf16.mxu0 %v1865_v16 }
  0x7d   : > { %756 = vmatprep.subr.bf16.mxu0 %v570_v48  ;;  %1738 = vmatpush3.bf16.msra.mxu1 %v557_v43 }
  0x7e   : > { %1739 = vmatprep.subr.bf16.mxu1 %v564_v52 }
  0x80   : > { %757 = vmatpush1.bf16.msra.mxu0 %v569_v55  ;;  %732 = vmatmul.mubr.bf16.gmra.mrb[12].mxu1 %v1791_v44 }
  0x81   : > { %1740 = vmatpush3.bf16.msra.mxu1 %v564_v52  ;;  %1743 = vmatprep.mubr.bf16.mxu1 %v2024_v49  ;;  %v370_v52 = vld [vmem:[#allocation2 + $0xf0] sm:$0xff] }
  0x82   : > { %1741 = vmatprep.subr.bf16.mxu1 %v571_v56 }
  0x83   : > { %775 = vmatmul.mubr.bf16.vlgmr.msra.gmra.mrb[16].mxu0 %v2024_v49 }
  0x84   : > { %784 = vmatprep.mubr.bf16.mxu0 %v1865_v16 }
  0x85   : > { %1742 = vmatpush3.bf16.msra.mxu1 %v571_v56  ;;  %v377_v56 = vld [vmem:[#allocation2 + $0x128] sm:$0xff] }
  0x88   : > { %1744 = vmatmul.mubr.bf16.vlgmr.msra.gmra.mrb[16].mxu1 %v2041_v5 }
  0x89   : > { %1747 = vmatprep.mubr.bf16.mxu1 %v2060_v25 }
  0x8b   : > { %785 = vmatmul.mubr.bf16.gmra.mrb[20].mxu0 %v2041_v5  ;;  %v343_v5 = vld [vmem:[#allocation2 + $0x18] sm:$0xff] }
  0x8c   : > { %794 = vmatprep.mubr.bf16.mxu0 %v1865_v16 }
  0x90   : > { %1748 = vmatmul.mubr.bf16.gmra.mrb[20].mxu1 %v1791_v44 }
  0x93   : > { %795 = vmatmul.mubr.bf16.gmra.mrb[24].mxu0 %v2060_v25 }
  0x94   : > { %804 = vmatprep.mubr.bf16.mxu0 %v1865_v16  ;;  %v349_v16 = vld [vmem:[#allocation2 + $0x48] sm:$0xff] }
  0x9b   : > { %805 = vmatmul.mubr.bf16.gmra.mrb[28].mxu0 %v1791_v44 }
 0x136   : > { %v630_v49 = vpop.f32.mrb[0].mxu0 }
 0x137   : > { %v880_v60 = vadd.f32 %v630_v49, %v340_v57  ;;  %v632_v61 = vpop.f32.mrb[1].mxu0  ;;  %v382_v57 = vld [vmem:[#allocation2 + $0x150] sm:$0xff] }
 0x138   : > { %v881_v63 = vadd.f32 %v632_v61, %v341_v58  ;;  %v634_v0 = vpop.f32.mrb[2].mxu0 }
 0x139   : > { %936 = vst [vmem:[#allocation2] sm:$0xff] %v880_v60  ;;  %v887_v1 = vadd.f32 %v634_v0, %v347_v59  ;;  %v636_v2 = vpop.f32.mrb[3].mxu0  ;;  %v378_v59 = vld [vmem:[#allocation2 + $0x130] sm:$0xff]  ;;  %v383_v60 = vld [vmem:[#allocation2 + $0x158] sm:$0xff]  ;;  %v389_v0 = vld [vmem:[#allocation2 + $0x188] sm:$0xff] }
 0x13a   : > { %937 = vst [vmem:[#allocation2 + $0x8] sm:$0xff] %v881_v63  ;;  %v888_v4 = vadd.f32 %v636_v2, %v348_v62 }
 0x13b   : > { %944 = vst [vmem:[#allocation2 + $0x38] sm:$0xff] %v887_v1  ;;  %v703_v6 = vpop.f32.mrb[0].mxu1 }
 0x13c   : > { %945 = vst [vmem:[#allocation2 + $0x40] sm:$0xff] %v888_v4  ;;  %v882_v8 = vadd.f32 %v703_v6, %v342_v3  ;;  %v705_v9 = vpop.f32.mrb[1].mxu1 }
 0x13d   : > { %v883_v12 = vadd.f32 %v705_v9, %v343_v5  ;;  %v707_v13 = vpop.f32.mrb[2].mxu1  ;;  %v390_v5 = vld [vmem:[#allocation2 + $0x190] sm:$0xff] }
 0x13e   : > { %v640_v14 = vpop.f32.mrb[4].mxu0  ;;  %938 = vst [vmem:[#allocation2 + $0x10] sm:$0xff] %v882_v8  ;;  %v889_v17 = vadd.f32 %v707_v13, %v349_v16  ;;  %v709_v18 = vpop.f32.mrb[3].mxu1 }
 0x13f   : > { %v894_v19 = vadd.f32 %v640_v14, %v354_v7  ;;  %v642_v20 = vpop.f32.mrb[5].mxu0  ;;  %939 = vst [vmem:[#allocation2 + $0x18] sm:$0xff] %v883_v12  ;;  %v890_v22 = vadd.f32 %v709_v18, %v350_v10  ;;  %v384_v10 = vld [vmem:[#allocation2 + $0x160] sm:$0xff]  ;;  %v385_v12 = vld [vmem:[#allocation2 + $0x168] sm:$0xff]  ;;  %v391_v14 = vld [vmem:[#allocation2 + $0x198] sm:$0xff] }
 0x140   : > { %v895_v23 = vadd.f32 %v642_v20, %v355_v11  ;;  %v644_v24 = vpop.f32.mrb[6].mxu0  ;;  %946 = vst [vmem:[#allocation2 + $0x48] sm:$0xff] %v889_v17  ;;  %v345_v20 = vld [vmem:[#allocation2 + $0x28] sm:$0xff] }
 0x141   : > { %951 = vst [vmem:[#allocation2 + $0x70] sm:$0xff] %v894_v19  ;;  %v901_v25 = vadd.f32 %v644_v24, %v361_v15  ;;  %v646_v26 = vpop.f32.mrb[7].mxu0  ;;  %947 = vst [vmem:[#allocation2 + $0x50] sm:$0xff] %v890_v22  ;;  %v344_v15 = vld [vmem:[#allocation2 + $0x20] sm:$0xff]  ;;  %v351_v24 = vld [vmem:[#allocation2 + $0x58] sm:$0xff] }
 0x142   : > { %952 = vst [vmem:[#allocation2 + $0x78] sm:$0xff] %v895_v23  ;;  %v902_v28 = vadd.f32 %v646_v26, %v362_v21  ;;  %v392_v19 = vld [vmem:[#allocation2 + $0x1a0] sm:$0xff] }
 0x143   : > { %958 = vst [vmem:[#allocation2 + $0xa8] sm:$0xff] %v901_v25  ;;  %v713_v30 = vpop.f32.mrb[4].mxu1 }
 0x144   : > { %959 = vst [vmem:[#allocation2 + $0xb0] sm:$0xff] %v902_v28  ;;  %v896_v33 = vadd.f32 %v713_v30, %v356_v27  ;;  %v715_v34 = vpop.f32.mrb[5].mxu1 }
 0x145   : > { %v897_v37 = vadd.f32 %v715_v34, %v357_v29  ;;  %v717_v38 = vpop.f32.mrb[6].mxu1  ;;  %v352_v29 = vld [vmem:[#allocation2 + $0x60] sm:$0xff] }
 0x146   : > { %v650_v39 = vpop.f32.mrb[8].mxu0  ;;  %953 = vst [vmem:[#allocation2 + $0x80] sm:$0xff] %v896_v33  ;;  %v903_v41 = vadd.f32 %v717_v38, %v363_v31  ;;  %v719_v42 = vpop.f32.mrb[7].mxu1 }
 0x147   : > { %v908_v43 = vadd.f32 %v650_v39, %v368_v32  ;;  %v652_v44 = vpop.f32.mrb[9].mxu0  ;;  %954 = vst [vmem:[#allocation2 + $0x88] sm:$0xff] %v897_v37  ;;  %v904_v46 = vadd.f32 %v719_v42, %v364_v35  ;;  %v360_v35 = vld [vmem:[#allocation2 + $0xa0] sm:$0xff]  ;;  %v346_v37 = vld [vmem:[#allocation2 + $0x30] sm:$0xff]  ;;  %v367_v39 = vld [vmem:[#allocation2 + $0xd8] sm:$0xff] }
 0x148   : > { %v909_v47 = vadd.f32 %v652_v44, %v369_v36  ;;  %v654_v48 = vpop.f32.mrb[10].mxu0  ;;  %960 = vst [vmem:[#allocation2 + $0xb8] sm:$0xff] %v903_v41  ;;  %v359_v44 = vld [vmem:[#allocation2 + $0x98] sm:$0xff] }
 0x149   : > { %965 = vst [vmem:[#allocation2 + $0xe0] sm:$0xff] %v908_v43  ;;  %v915_v50 = vadd.f32 %v654_v48, %v375_v40  ;;  %v656_v51 = vpop.f32.mrb[11].mxu0  ;;  %961 = vst [vmem:[#allocation2 + $0xc0] sm:$0xff] %v904_v46  ;;  %v358_v40 = vld [vmem:[#allocation2 + $0x90] sm:$0xff]  ;;  %v353_v43 = vld [vmem:[#allocation2 + $0x68] sm:$0xff] }
 0x14a   : > { %966 = vst [vmem:[#allocation2 + $0xe8] sm:$0xff] %v909_v47  ;;  %v916_v53 = vadd.f32 %v656_v51, %v376_v45  ;;  %v365_v48 = vld [vmem:[#allocation2 + $0xc8] sm:$0xff] }
 0x14b   : > { %972 = vst [vmem:[#allocation2 + $0x118] sm:$0xff] %v915_v50  ;;  %v723_v55 = vpop.f32.mrb[8].mxu1 }
 0x14c   : > { %973 = vst [vmem:[#allocation2 + $0x120] sm:$0xff] %v916_v53  ;;  %v910_v58 = vadd.f32 %v723_v55, %v370_v52  ;;  %v725_v49 = vpop.f32.mrb[9].mxu1 }
 0x14d   : > { %v911_v61 = vadd.f32 %v725_v49, %v371_v54  ;;  %v727_v62 = vpop.f32.mrb[10].mxu1  ;;  %v366_v54 = vld [vmem:[#allocation2 + $0xd0] sm:$0xff] }
 0x14e   : > { %v660_v63 = vpop.f32.mrb[12].mxu0  ;;  %967 = vst [vmem:[#allocation2 + $0xf0] sm:$0xff] %v910_v58  ;;  %v917_v1 = vadd.f32 %v727_v62, %v377_v56  ;;  %v729_v2 = vpop.f32.mrb[11].mxu1 }
 0x14f   : > { %v922_v3 = vadd.f32 %v660_v63, %v382_v57  ;;  %v662_v4 = vpop.f32.mrb[13].mxu0  ;;  %968 = vst [vmem:[#allocation2 + $0xf8] sm:$0xff] %v911_v61  ;;  %v918_v6 = vadd.f32 %v729_v2, %v378_v59  ;;  %v388_v59 = vld [vmem:[#allocation2 + $0x180] sm:$0xff]  ;;  %v374_v61 = vld [vmem:[#allocation2 + $0x110] sm:$0xff]  ;;  %v395_v63 = vld [vmem:[#allocation2 + $0x1b8] sm:$0xff] }
 0x150   : > { %v923_v16 = vadd.f32 %v662_v4, %v383_v60  ;;  %v664_v7 = vpop.f32.mrb[14].mxu0  ;;  %974 = vst [vmem:[#allocation2 + $0x128] sm:$0xff] %v917_v1  ;;  %v373_v4 = vld [vmem:[#allocation2 + $0x108] sm:$0xff] }
 0x151   : > { %979 = vst [vmem:[#allocation2 + $0x150] sm:$0xff] %v922_v3  ;;  %v929_v8 = vadd.f32 %v664_v7, %v389_v0  ;;  %v666_v9 = vpop.f32.mrb[15].mxu0  ;;  %975 = vst [vmem:[#allocation2 + $0x130] sm:$0xff] %v918_v6  ;;  %v372_v0 = vld [vmem:[#allocation2 + $0x100] sm:$0xff]  ;;  %v381_v3 = vld [vmem:[#allocation2 + $0x148] sm:$0xff] }
 0x152   : > { %980 = vst [vmem:[#allocation2 + $0x158] sm:$0xff] %v923_v16  ;;  %v930_v11 = vadd.f32 %v666_v9, %v390_v5  ;;  %v379_v7 = vld [vmem:[#allocation2 + $0x138] sm:$0xff] }
 0x153   : > { %986 = vst [vmem:[#allocation2 + $0x188] sm:$0xff] %v929_v8  ;;  %v733_v13 = vpop.f32.mrb[12].mxu1 }
 0x154   : > { %987 = vst [vmem:[#allocation2 + $0x190] sm:$0xff] %v930_v11  ;;  %v924_v17 = vadd.f32 %v733_v13, %v384_v10  ;;  %v735_v18 = vpop.f32.mrb[13].mxu1 }
 0x155   : > { %v925_v21 = vadd.f32 %v735_v18, %v385_v12  ;;  %v737_v22 = vpop.f32.mrb[14].mxu1  ;;  %v380_v12 = vld [vmem:[#allocation2 + $0x140] sm:$0xff] }
 0x156   : > { %v776_v23 = vpop.f32.mrb[16].mxu0  ;;  %981 = vst [vmem:[#allocation2 + $0x160] sm:$0xff] %v924_v17  ;;  %v931_v25 = vadd.f32 %v737_v22, %v391_v14  ;;  %v739_v26 = vpop.f32.mrb[15].mxu1 }
 0x157   : > { %v884_v27 = vadd.f32 %v776_v23, %v344_v15  ;;  %v778_v28 = vpop.f32.mrb[17].mxu0  ;;  %982 = vst [vmem:[#allocation2 + $0x168] sm:$0xff] %v925_v21  ;;  %v932_v30 = vadd.f32 %v739_v26, %v392_v19  ;;  %v387_v21 = vld [vmem:[#allocation2 + $0x178] sm:$0xff]  ;;  %v393_v23 = vld [vmem:[#allocation2 + $0x1a8] sm:$0xff]  ;;  %v394_v26 = vld [vmem:[#allocation2 + $0x1b0] sm:$0xff] }
 0x158   : > { %v885_v31 = vadd.f32 %v778_v28, %v345_v20  ;;  %v780_v32 = vpop.f32.mrb[18].mxu0  ;;  %988 = vst [vmem:[#allocation2 + $0x198] sm:$0xff] %v931_v25  ;;  %v386_v20 = vld [vmem:[#allocation2 + $0x170] sm:$0xff] }
 0x159   : > { %940 = vst [vmem:[#allocation2 + $0x20] sm:$0xff] %v884_v27  ;;  %v891_v33 = vadd.f32 %v780_v32, %v351_v24  ;;  %v782_v34 = vpop.f32.mrb[19].mxu0  ;;  %989 = vst [vmem:[#allocation2 + $0x1a0] sm:$0xff] %v932_v30 }
 0x15a   : > { %941 = vst [vmem:[#allocation2 + $0x28] sm:$0xff] %v885_v31  ;;  %v892_v36 = vadd.f32 %v782_v34, %v352_v29 }
 0x15b   : > { %948 = vst [vmem:[#allocation2 + $0x58] sm:$0xff] %v891_v33  ;;  %v1745_v38 = vpop.f32.mrb[16].mxu1 }
 0x15c   : > { %949 = vst [vmem:[#allocation2 + $0x60] sm:$0xff] %v892_v36  ;;  %v900_v41 = vadd.f32 %v1745_v38, %v360_v35  ;;  %v849_v42 = vpop.f32.mrb[17].mxu1 }
 0x15d   : > { %v886_v45 = vadd.f32 %v849_v42, %v346_v37  ;;  %v1746_v46 = vpop.f32.mrb[18].mxu1 }
 0x15e   : > { %v786_v47 = vpop.f32.mrb[20].mxu0  ;;  %957 = vst.msk [vmem:[#allocation2 + $0xa0] sm:$0xff] %vm942_vm1, %v900_v41  ;;  %v907_v50 = vadd.f32 %v1746_v46, %v367_v39  ;;  %v852_v51 = vpop.f32.mrb[19].mxu1 }
 0x15f   : > { %v898_v52 = vadd.f32 %v786_v47, %v358_v40  ;;  %v788_v53 = vpop.f32.mrb[21].mxu0  ;;  %943 = vst.msk [vmem:[#allocation2 + $0x30] sm:$0xff] %vm942_vm1, %v886_v45  ;;  %v893_v55 = vadd.f32 %v852_v51, %v353_v43 }
 0x160   : > { %v899_v56 = vadd.f32 %v788_v53, %v359_v44  ;;  %v790_v57 = vpop.f32.mrb[22].mxu0  ;;  %964 = vst.msk [vmem:[#allocation2 + $0xd8] sm:$0xff] %vm942_vm1, %v907_v50 }
 0x161   : > { %955 = vst [vmem:[#allocation2 + $0x90] sm:$0xff] %v898_v52  ;;  %v905_v58 = vadd.f32 %v790_v57, %v365_v48  ;;  %v792_v49 = vpop.f32.mrb[23].mxu0  ;;  %950 = vst.msk [vmem:[#allocation2 + $0x68] sm:$0xff] %vm942_vm1, %v893_v55 }
 0x162   : > { %956 = vst [vmem:[#allocation2 + $0x98] sm:$0xff] %v899_v56  ;;  %v906_v60 = vadd.f32 %v792_v49, %v366_v54 }
 0x163   : > { %962 = vst [vmem:[#allocation2 + $0xc8] sm:$0xff] %v905_v58  ;;  %v1749_v62 = vpop.f32.mrb[20].mxu1 }
 0x164   : > { %963 = vst [vmem:[#allocation2 + $0xd0] sm:$0xff] %v906_v60  ;;  %v928_v1 = vadd.f32 %v1749_v62, %v388_v59  ;;  %v865_v2 = vpop.f32.mrb[21].mxu1 }
 0x165   : > { %v914_v5 = vadd.f32 %v865_v2, %v374_v61  ;;  %v1750_v6 = vpop.f32.mrb[22].mxu1 }
 0x166   : > { %v796_v16 = vpop.f32.mrb[24].mxu0  ;;  %985 = vst.msk [vmem:[#allocation2 + $0x180] sm:$0xff] %vm942_vm1, %v928_v1  ;;  %v935_v8 = vadd.f32 %v1750_v6, %v395_v63  ;;  %v868_v9 = vpop.f32.mrb[23].mxu1 }
 0x167   : > { %v912_v10 = vadd.f32 %v796_v16, %v372_v0  ;;  %v798_v11 = vpop.f32.mrb[25].mxu0  ;;  %971 = vst.msk [vmem:[#allocation2 + $0x110] sm:$0xff] %vm942_vm1, %v914_v5  ;;  %v921_v13 = vadd.f32 %v868_v9, %v381_v3 }
 0x168   : > { %v913_v14 = vadd.f32 %v798_v11, %v373_v4  ;;  %v800_v15 = vpop.f32.mrb[26].mxu0  ;;  %992 = vst.msk [vmem:[#allocation2 + $0x1b8] sm:$0xff] %vm942_vm1, %v935_v8 }
 0x169   : > { %969 = vst [vmem:[#allocation2 + $0x100] sm:$0xff] %v912_v10  ;;  %v919_v17 = vadd.f32 %v800_v15, %v379_v7  ;;  %v802_v18 = vpop.f32.mrb[27].mxu0  ;;  %978 = vst.msk [vmem:[#allocation2 + $0x148] sm:$0xff] %vm942_vm1, %v921_v13 }
 0x16a   : > { %970 = vst [vmem:[#allocation2 + $0x108] sm:$0xff] %v913_v14  ;;  %v920_v19 = vadd.f32 %v802_v18, %v380_v12 }
 0x16b   : > { %976 = vst [vmem:[#allocation2 + $0x138] sm:$0xff] %v919_v17 }
 0x16c   : > { %977 = vst [vmem:[#allocation2 + $0x140] sm:$0xff] %v920_v19 }
 0x16e   : > { %v806_v22 = vpop.f32.mrb[28].mxu0  ;;  %996 = sbr.rel (%p1710_p10) target bundleno = 893 (0x37d), region = 85 }
 0x16f   : > { %v926_v24 = vadd.f32 %v806_v22, %v386_v20  ;;  %v808_v25 = vpop.f32.mrb[29].mxu0 }
 0x170   : > { %v927_v27 = vadd.f32 %v808_v25, %v387_v21  ;;  %v810_v28 = vpop.f32.mrb[30].mxu0 }
 0x171   : > { %983 = vst [vmem:[#allocation2 + $0x170] sm:$0xff] %v926_v24  ;;  %v933_v29 = vadd.f32 %v810_v28, %v393_v23  ;;  %v812_v30 = vpop.f32.mrb[31].mxu0 }
 0x172   : > { %984 = vst [vmem:[#allocation2 + $0x178] sm:$0xff] %v927_v27  ;;  %v934_v31 = vadd.f32 %v812_v30, %v394_v26 }
 0x173   : > { %990 = vst [vmem:[#allocation2 + $0x1a8] sm:$0xff] %v933_v29 }
 0x174   : > { %991 = vst [vmem:[#allocation2 + $0x1b0] sm:$0xff] %v934_v31 }
 0x175   : > { %v2106_v32 = vld [vmem:[#allocation2 + $0x70] sm:$0xff]  ;;  %v2108_v33 = vld [vmem:[#allocation2 + $0x78] sm:$0xff]  ;;  %v2110_v34 = vld [vmem:[#allocation2 + $0x80] sm:$0xff] }
 0x176   : > { %2658 = vst [vmem:[#allocation7_spill] sm:$0xff] %v2106_v32  ;;  %2659 = vst [vmem:[#allocation8_spill] sm:$0xff] %v2108_v33  ;;  %v1071_v35 = vadd.f32 %v2108_v33, %v2106_v32  ;;  %v2114_v36 = vld [vmem:[#allocation2 + $0x88] sm:$0xff]  ;;  %v2116_v37 = vld [vmem:[#allocation2] sm:$0xff] }
 0x177   : > { %2660 = vst [vmem:[#allocation9_spill] sm:$0xff] %v2110_v34  ;;  %2661 = vst [vmem:[#allocation10_spill] sm:$0xff] %v2114_v36  ;;  %v2118_v38 = vld [vmem:[#allocation2 + $0x8] sm:$0xff]  ;;  %v2120_v39 = vld [vmem:[#allocation2 + $0x90] sm:$0xff] }
 0x178   : > { %2662 = vst [vmem:[#allocation11_spill] sm:$0xff] %v2116_v37  ;;  %2663 = vst [vmem:[#allocation12_spill] sm:$0xff] %v2118_v38  ;;  %v1072_v40 = vadd.f32 %v1071_v35, %v2110_v34  ;;  %v2123_v41 = vld [vmem:[#allocation2 + $0x10] sm:$0xff]  ;;  %v1053_v42 = vadd.f32 %v2118_v38, %v2116_v37  ;;  %v2127_v43 = vld [vmem:[#allocation2 + $0x98] sm:$0xff] }
 0x179   : > { %2664 = vst [vmem:[#allocation13_spill] sm:$0xff] %v2120_v39  ;;  %2665 = vst [vmem:[#allocation14_spill] sm:$0xff] %v2123_v41  ;;  %v2129_v44 = vld [vmem:[#allocation2 + $0x18] sm:$0xff]  ;;  %v2131_v45 = vld [vmem:[#allocation2 + $0xa8] sm:$0xff] }
 0x17a   : > { %2666 = vst [vmem:[#allocation15_spill] sm:$0xff] %v2127_v43  ;;  %2667 = vst [vmem:[#allocation16_spill] sm:$0xff] %v2129_v44  ;;  %v2133_v46 = vld [vmem:[#allocation2 + $0xa0] sm:$0xff]  ;;  %v1073_v47 = vadd.f32 %v1072_v40, %v2114_v36  ;;  %v1054_v48 = vadd.f32 %v1053_v42, %v2123_v41  ;;  %v2137_v50 = vld [vmem:[#allocation2 + $0xb0] sm:$0xff] }
 0x17b   : > { %2668 = vst [vmem:[#allocation17_spill] sm:$0xff] %v2133_v46  ;;  %v2139_v51 = vld [vmem:[#allocation2 + $0xb8] sm:$0xff]  ;;  %v2141_v52 = vld [vmem:[#allocation2 + $0x20] sm:$0xff]  ;;  %v2143_v53 = vld [vmem:[#allocation2 + $0x30] sm:$0xff]  ;;  %v1080_v55 = vadd.f32 %v2137_v50, %v2131_v45  ;;  %v1076_v60 = vsel %vm942_vm1, %v2133_v46, 0.0 }
 0x17c   : > { %2669 = vst [vmem:[#allocation18_spill] sm:$0xff] %v2141_v52  ;;  %2670 = vst [vmem:[#allocation19_spill] sm:$0xff] %v2143_v53  ;;  %v2145_v54 = vld [vmem:[#allocation2 + $0xc0] sm:$0xff]  ;;  %v1074_v56 = vadd.f32 %v1073_v47, %v2120_v39  ;;  %v1055_v57 = vadd.f32 %v1054_v48, %v2129_v44  ;;  %v2151_v58 = vld [vmem:[#allocation2 + $0x38] sm:$0xff]  ;;  %v1058_v16 = vsel %vm942_vm1, %v2143_v53, 0.0 }
 0x17d   : > { %v2153_v49 = vld [vmem:[#allocation2 + $0x40] sm:$0xff]  ;;  %v2155_v59 = vld [vmem:[#allocation2 + $0x48] sm:$0xff]  ;;  %v1081_v63 = vadd.f32 %v1080_v55, %v2139_v51  ;;  %v2168_v3 = vld [vmem:[#allocation2 + $0xd0] sm:$0xff] }
 0x17e   : > { %v2159_v61 = vld [vmem:[#allocation2 + $0x28] sm:$0xff]  ;;  %v1062_v0 = vadd.f32 %v2153_v49, %v2151_v58  ;;  %v1075_v1 = vadd.f32 %v1074_v56, %v2127_v43  ;;  %v1056_v2 = vadd.f32 %v1055_v57, %v2141_v52  ;;  %v2170_v4 = vld [vmem:[#allocation2 + $0x50] sm:$0xff]  ;;  %v2172_v5 = vld [vmem:[#allocation2 + $0xe0] sm:$0xff] }
 0x17f   : > { %2671 = vst [vmem:[#allocation20_spill] sm:$0xff] %v2159_v61  ;;  %v2161_v62 = vld [vmem:[#allocation2 + $0xc8] sm:$0xff]  ;;  %v2178_v7 = vld [vmem:[#allocation2 + $0xd8] sm:$0xff]  ;;  %v1082_v8 = vadd.f32 %v1081_v63, %v2145_v54  ;;  %v2184_v11 = vld [vmem:[#allocation2 + $0xf0] sm:$0xff] }
 0x180   : > { %v2174_v6 = vld [vmem:[#allocation2 + $0xe8] sm:$0xff]  ;;  %v2181_v9 = vld [vmem:[#allocation2 + $0x58] sm:$0xff]  ;;  %v1063_v10 = vadd.f32 %v1062_v0, %v2155_v59  ;;  %2672 = vst [vmem:[#allocation21_spill] sm:$0xff] %v2184_v11  ;;  %v1077_v13 = vadd.f32 %v1076_v60, %v1075_v1  ;;  %v1057_v14 = vadd.f32 %v1056_v2, %v2159_v61  ;;  %v2189_v15 = vld [vmem:[#allocation2 + $0x60] sm:$0xff]  ;;  %v1085_v26 = vsel %vm942_vm1, %v2178_v7, 0.0 }
 0x181   : > { %v1089_v12 = vadd.f32 %v2174_v6, %v2172_v5  ;;  %v2191_v17 = vld [vmem:[#allocation2 + $0xf8] sm:$0xff]  ;;  %v1083_v19 = vadd.f32 %v1082_v8, %v2161_v62  ;;  %v2196_v20 = vld [vmem:[#allocation2 + $0x68] sm:$0xff]  ;;  %v2200_v23 = vld [vmem:[#allocation2 + $0x120] sm:$0xff] }
 0x182   : > { %2673 = vst [vmem:[#allocation22_spill] sm:$0xff] %v2191_v17  ;;  %v2193_v18 = vld [vmem:[#allocation2 + $0x118] sm:$0xff]  ;;  %v1064_v21 = vadd.f32 %v1063_v10, %v2170_v4  ;;  %v2202_v24 = vld [vmem:[#allocation2 + $0x128] sm:$0xff]  ;;  %1078 = vadd.xlane.f32.xlu1 %v1077_v13  ;;  %v1059_v25 = vadd.f32 %v1058_v16, %v1057_v14  ;;  %v2206_v27 = vld [vmem:[#allocation2 + $0x100] sm:$0xff]  ;;  %v1067_v55 = vsel %vm942_vm1, %v2196_v20, 0.0 }
 0x183   : > { %v1090_v22 = vadd.f32 %v1089_v12, %v2184_v11  ;;  %2674 = vst [vmem:[#allocation23_spill] sm:$0xff] %v2206_v27  ;;  %v2208_v28 = vld [vmem:[#allocation2 + $0x110] sm:$0xff]  ;;  %v1098_v30 = vadd.f32 %v2200_v23, %v2193_v18  ;;  %v1084_v31 = vadd.f32 %v1083_v19, %v2168_v3  ;;  %v2219_v47 = vld [vmem:[#allocation2 + $0x158] sm:$0xff]  ;;  %v2221_v48 = vld [vmem:[#allocation2 + $0x160] sm:$0xff] }
 0x184   : > { %2675 = vst [vmem:[#allocation24_spill] sm:$0xff] %v2208_v28  ;;  %v2210_v29 = vld [vmem:[#allocation2 + $0x130] sm:$0xff]  ;;  %v1065_v35 = vadd.f32 %v1064_v21, %v2181_v9  ;;  %2677 = vst [vmem:[#allocation26_spill] sm:$0xff] %v2219_v47  ;;  %1060 = vadd.xlane.f32.xlu0 %v1059_v25  ;;  %v2225_v56 = vld [vmem:[#allocation2 + $0x108] sm:$0xff]  ;;  %v1094_v12 = vsel %vm942_vm1, %v2208_v28, 0.0 }
 0x185   : > { %v1091_v40 = vadd.f32 %v1090_v22, %v2191_v17  ;;  %v2217_v42 = vld [vmem:[#allocation2 + $0x150] sm:$0xff]  ;;  %2678 = vst [vmem:[#allocation27_spill] sm:$0xff] %v2221_v48  ;;  %2679 = vst [vmem:[#allocation28_spill] sm:$0xff] %v2225_v56  ;;  %v2227_v57 = vld [vmem:[#allocation2 + $0x138] sm:$0xff]  ;;  %v1099_v60 = vadd.f32 %v1098_v30, %v2202_v24  ;;  %v1086_v0 = vadd.f32 %v1085_v26, %v1084_v31 }
 0x186   : > { %2676 = vst [vmem:[#allocation25_spill] sm:$0xff] %v2217_v42  ;;  %v1107_v63 = vadd.f32 %v2219_v47, %v2217_v42  ;;  %v1066_v1 = vadd.f32 %v1065_v35, %v2189_v15  ;;  %v2234_v16 = vld [vmem:[#allocation2 + $0x168] sm:$0xff]  ;;  %v2238_v10 = vld [vmem:[#allocation2 + $0x190] sm:$0xff]  ;;  %v2246_v21 = vld [vmem:[#allocation2 + $0x198] sm:$0xff] }
 0x187   : > { %v1092_v2 = vadd.f32 %v1091_v40, %v2206_v27  ;;  %2680 = vst [vmem:[#allocation29_spill] sm:$0xff] %v2234_v16  ;;  %v2236_v8 = vld [vmem:[#allocation2 + $0x188] sm:$0xff]  ;;  %2682 = vst [vmem:[#allocation31_spill] sm:$0xff] %v2238_v10  ;;  %v1100_v14 = vadd.f32 %v1099_v60, %v2210_v29  ;;  %1087 = vadd.xlane.f32.xlu1 %v1086_v0  ;;  %v2251_v30 = vld [vmem:[#allocation2 + $0x140] sm:$0xff] }
 0x188   : > { %2681 = vst [vmem:[#allocation30_spill] sm:$0xff] %v2236_v8  ;;  %v2242_v13 = vld [vmem:[#allocation2 + $0x148] sm:$0xff]  ;;  %v1108_v19 = vadd.f32 %v1107_v63, %v2221_v48  ;;  %2683 = vst [vmem:[#allocation32_spill] sm:$0xff] %v2246_v21  ;;  %v1116_v22 = vadd.f32 %v2238_v10, %v2236_v8  ;;  %v1068_v25 = vadd.f32 %v1067_v55, %v1066_v1  ;;  %v2253_v31 = vld [vmem:[#allocation2 + $0x170] sm:$0xff] }
 0x189   : > { %v1093_v26 = vadd.f32 %v1092_v2, %v2225_v56  ;;  %2684 = vst [vmem:[#allocation33_spill] sm:$0xff] %v2253_v31  ;;  %v2255_v35 = vld [vmem:[#allocation2 + $0x1a0] sm:$0xff]  ;;  %v1101_v40 = vadd.f32 %v1100_v14, %v2227_v57  ;;  %v1103_v55 = vsel %vm942_vm1, %v2242_v13, 0.0  ;;  %v2264_v0 = vld [vmem:[#allocation2 + $0x178] sm:$0xff]  ;;  %v2266_v1 = vld [vmem:[#allocation2 + $0x1a8] sm:$0xff] }
 0x18a   : > { %2685 = vst [vmem:[#allocation34_spill] sm:$0xff] %v2255_v35  ;;  %v2258_v60 = vld [vmem:[#allocation2 + $0x180] sm:$0xff]  ;;  %v1109_v63 = vadd.f32 %v1108_v19, %v2234_v16  ;;  %v1117_v48 = vadd.f32 %v1116_v22, %v2246_v21  ;;  %1069 = vadd.xlane.f32.xlu0 %v1068_v25  ;;  %2687 = vst [vmem:[#allocation36_spill] sm:$0xff] %v2264_v0  ;;  %v2270_v14 = vld [vmem:[#allocation2 + $0x1b8] sm:$0xff] }
 0x18b   : > { %2686 = vst [vmem:[#allocation35_spill] sm:$0xff] %v2258_v60  ;;  %v1095_v10 = vadd.f32 %v1094_v12, %v1093_v26  ;;  %2688 = vst [vmem:[#allocation37_spill] sm:$0xff] %v2266_v1  ;;  %v1102_v2 = vadd.f32 %v1101_v40, %v2251_v30  ;;  %v1112_v19 = vsel %vm942_vm1, %v2258_v60, 0.0  ;;  %v2275_v22 = vld [vmem:[#allocation2 + $0x1b0] sm:$0xff]  ;;  %v1121_v40 = vsel %vm942_vm1, %v2270_v14, 0.0 }
 0x18c   : > { %v1110_v8 = vadd.f32 %v1109_v63, %v2253_v31  ;;  %2689 = vst [vmem:[#allocation38_spill] sm:$0xff] %v2270_v14  ;;  %v1118_v47 = vadd.f32 %v1117_v48, %v2255_v35  ;;  %2690 = vst [vmem:[#allocation39_spill] sm:$0xff] %v2275_v22 }
 0x18d   : > { %v1104_v12 = vadd.f32 %v1103_v55, %v1102_v2 }
 0x18e   : > { %v1111_v25 = vadd.f32 %v1110_v8, %v2264_v0  ;;  %v1119_v26 = vadd.f32 %v1118_v47, %v2266_v1  ;;  %1096 = vadd.xlane.f32.xlu0 %v1095_v10 }
 0x18f   : > { %1105 = vadd.xlane.f32.xlu1 %v1104_v12 }
 0x190   : > { %v1113_v63 = vadd.f32 %v1112_v19, %v1111_v25  ;;  %v1120_v21 = vadd.f32 %v1119_v26, %v2275_v22 }
 0x192   : > { %v1122_v31 = vadd.f32 %v1121_v40, %v1120_v21  ;;  %1114 = vadd.xlane.f32.xlu0 %v1113_v63 }
 0x194   : > { %1123 = vadd.xlane.f32.xlu1 %v1122_v31 }
 0x20f   : > { %v1079_v48 = vpop.xlane.xlu1 %1078 }
 0x210   : > { %v2282_v35 = vmul.f32 0.0012755102, %v1079_v48 }
 0x211   : > { %v1061_v60 = vpop.xlane.xlu0 %1060 }
 0x212   : > { %v2284_v55 = vmul.f32 0.0012755102, %v1061_v60  ;;  %v1148_v47 = vsub.f32 %v2106_v32, %v2282_v35  ;;  %v1149_v8 = vsub.f32 %v2108_v33, %v2282_v35  ;;  %v1150_v10 = vsub.f32 %v2110_v34, %v2282_v35 }
 0x213   : > { %v1151_v21 = vsub.f32 %v2114_v36, %v2282_v35  ;;  %v1152_v12 = vsub.f32 %v2120_v39, %v2282_v35  ;;  %v1153_v33 = vsub.f32 %v2127_v43, %v2282_v35  ;;  %v1154_v39 = vsub.f32 %v2133_v46, %v2282_v35 }
 0x214   : > { %2691 = vst [vmem:[#allocation40_spill] sm:$0xff] %v2284_v55  ;;  %v1088_v2 = vpop.xlane.xlu1 %1087  ;;  %v1134_v31 = vsub.f32 %v2116_v37, %v2284_v55  ;;  %v1135_v60 = vsub.f32 %v2118_v38, %v2284_v55  ;;  %v1136_v19 = vsub.f32 %v2123_v41, %v2284_v55  ;;  %v1137_v25 = vsub.f32 %v2129_v44, %v2284_v55 }
 0x215   : > { %v1138_v26 = vsub.f32 %v2141_v52, %v2284_v55  ;;  %v1139_v40 = vsub.f32 %v2159_v61, %v2284_v55  ;;  %v1140_v63 = vsub.f32 %v2143_v53, %v2284_v55  ;;  %v2314_v32 = vmul.f32 0.0012755102, %v1088_v2 }
 0x216   : > { %v1190_v36 = vmul.f32 %v1134_v31, %v1134_v31  ;;  %v1191_v34 = vmul.f32 %v1135_v60, %v1135_v60  ;;  %v1192_v52 = vmul.f32 %v1136_v19, %v1136_v19  ;;  %v1204_v61 = vmul.f32 %v1148_v47, %v1148_v47 }
 0x217   : > { %v1070_v48 = vpop.xlane.xlu0 %1069  ;;  %v1196_v41 = vmul.f32 %v1140_v63, %v1140_v63  ;;  %v1205_v37 = vmul.f32 %v1149_v8, %v1149_v8  ;;  %v1206_v22 = vmul.f32 %v1150_v10, %v1150_v10  ;;  %v1193_v53 = vmul.f32 %v1137_v25, %v1137_v25 }
 0x218   : > { %v2316_v44 = vmul.f32 0.0012755102, %v1070_v48  ;;  %v1246_v38 = vadd.f32 %v1191_v34, %v1190_v36  ;;  %v1194_v55 = vmul.f32 %v1138_v26, %v1138_v26  ;;  %v1195_v31 = vmul.f32 %v1139_v40, %v1139_v40 }
 0x219   : > { %v1251_v60 = vsel %vm942_vm1, %v1196_v41, 0.0  ;;  %v1207_v1 = vmul.f32 %v1151_v21, %v1151_v21  ;;  %v1264_v0 = vadd.f32 %v1205_v37, %v1204_v61  ;;  %v1208_v46 = vmul.f32 %v1152_v12, %v1152_v12 }
 0x21a   : > { %v1247_v43 = vadd.f32 %v1246_v38, %v1192_v52  ;;  %v1141_v2 = vsub.f32 %v2151_v58, %v2316_v44  ;;  %v1210_v19 = vmul.f32 %v1154_v39, %v1154_v39  ;;  %v1142_v34 = vsub.f32 %v2153_v49, %v2316_v44 }
 0x21b   : > { %v1097_v14 = vpop.xlane.xlu0 %1096  ;;  %v1143_v36 = vsub.f32 %v2155_v59, %v2316_v44  ;;  %v1209_v8 = vmul.f32 %v1153_v33, %v1153_v33  ;;  %v1265_v10 = vadd.f32 %v1264_v0, %v1206_v22  ;;  %v1144_v38 = vsub.f32 %v2170_v4, %v2316_v44 }
 0x21c   : > { %v1106_v48 = vpop.xlane.xlu1 %1105  ;;  %v1248_v47 = vadd.f32 %v1247_v43, %v1193_v53  ;;  %v2327_v41 = vmul.f32 0.0012755102, %v1097_v14  ;;  %v1147_v52 = vsub.f32 %v2196_v20, %v2316_v44  ;;  %v1197_v39 = vmul.f32 %v1141_v2, %v1141_v2 }
 0x21d   : > { %v2329_v37 = vmul.f32 0.0012755102, %v1106_v48  ;;  %v1266_v12 = vadd.f32 %v1265_v10, %v1207_v1  ;;  %v1145_v25 = vsub.f32 %v2181_v9, %v2316_v44  ;;  %v1198_v43 = vmul.f32 %v1142_v34, %v1142_v34 }
 0x21e   : > { %v1249_v21 = vadd.f32 %v1248_v47, %v1194_v55  ;;  %v1269_v53 = vsel %vm942_vm1, %v1210_v19, 0.0  ;;  %v1146_v0 = vsub.f32 %v2189_v15, %v2316_v44  ;;  %v1199_v14 = vmul.f32 %v1143_v36, %v1143_v36 }
 0x21f   : > { %v1115_v61 = vpop.xlane.xlu0 %1114  ;;  %v1267_v40 = vadd.f32 %v1266_v12, %v1208_v46  ;;  %v1200_v63 = vmul.f32 %v1144_v38, %v1144_v38  ;;  %v1203_v2 = vmul.f32 %v1147_v52, %v1147_v52  ;;  %v1255_v48 = vadd.f32 %v1198_v43, %v1197_v39 }
 0x220   : > { %v2335_v33 = vmul.f32 0.0012755102, %v1115_v61  ;;  %v1250_v26 = vadd.f32 %v1249_v21, %v1195_v31  ;;  %v1155_v1 = vsub.f32 %v2131_v45, %v2314_v32  ;;  %v1156_v55 = vsub.f32 %v2137_v50, %v2314_v32 }
 0x221   : > { %v1124_v22 = vpop.xlane.xlu1 %1123  ;;  %v1157_v34 = vsub.f32 %v2139_v51, %v2314_v32  ;;  %v1268_v47 = vadd.f32 %v1267_v40, %v1209_v8  ;;  %v1201_v10 = vmul.f32 %v1145_v25, %v1145_v25  ;;  %v1158_v36 = vsub.f32 %v2145_v54, %v2314_v32 }
 0x222   : > { %v1252_v19 = vadd.f32 %v1251_v60, %v1250_v26  ;;  %v2348_v31 = vmul.f32 0.0012755102, %v1124_v22  ;;  %v1202_v46 = vmul.f32 %v1146_v0, %v1146_v0  ;;  %v1256_v38 = vadd.f32 %v1255_v48, %v1199_v14 }
 0x223   : > { %v1159_v52 = vsub.f32 %v2161_v62, %v2314_v32  ;;  %v1161_v39 = vsub.f32 %v2178_v7, %v2314_v32  ;;  %v1211_v61 = vmul.f32 %v1155_v1, %v1155_v1  ;;  %v1212_v21 = vmul.f32 %v1156_v55, %v1156_v55 }
 0x224   : > { %1253 = vadd.xlane.f32.xlu0 %v1252_v19  ;;  %v1213_v12 = vmul.f32 %v1157_v34, %v1157_v34  ;;  %v1270_v60 = vadd.f32 %v1269_v53, %v1268_v47  ;;  %v1257_v8 = vadd.f32 %v1256_v38, %v1200_v63  ;;  %v1260_v25 = vsel %vm942_vm1, %v1203_v2, 0.0 }
 0x225   : > { %v1160_v43 = vsub.f32 %v2168_v3, %v2314_v32  ;;  %v1214_v22 = vmul.f32 %v1158_v36, %v1158_v36  ;;  %v1273_v0 = vadd.f32 %v1212_v21, %v1211_v61  ;;  %v1162_v14 = vsub.f32 %v2172_v5, %v2327_v41 }
 0x226   : > { %v1163_v26 = vsub.f32 %v2174_v6, %v2327_v41  ;;  %v1258_v40 = vadd.f32 %v1257_v8, %v1201_v10  ;;  %v1215_v48 = vmul.f32 %v1159_v52, %v1159_v52  ;;  %v1164_v1 = vsub.f32 %v2184_v11, %v2327_v41 }
 0x227   : > { %v1165_v53 = vsub.f32 %v2191_v17, %v2327_v41  ;;  %v1217_v63 = vmul.f32 %v1161_v39, %v1161_v39  ;;  %v1274_v2 = vadd.f32 %v1273_v0, %v1213_v12  ;;  %v1166_v55 = vsub.f32 %v2206_v27, %v2327_v41  ;;  %v2703_v27 = vld [vmem:[#allocation39_spill] sm:$0xff] }
 0x228   : > { %1271 = vadd.xlane.f32.xlu0 %v1270_v60  ;;  %v1168_v34 = vsub.f32 %v2208_v28, %v2327_v41  ;;  %v1259_v19 = vadd.f32 %v1258_v40, %v1202_v46  ;;  %v1218_v47 = vmul.f32 %v1162_v14, %v1162_v14  ;;  %v1219_v36 = vmul.f32 %v1163_v26, %v1163_v26 }
 0x229   : > { %v1220_v10 = vmul.f32 %v1164_v1, %v1164_v1  ;;  %v1216_v38 = vmul.f32 %v1160_v43, %v1160_v43  ;;  %v1275_v52 = vadd.f32 %v1274_v2, %v1214_v22  ;;  %v1167_v61 = vsub.f32 %v2225_v56, %v2327_v41 }
 0x22a   : > { %v1221_v21 = vmul.f32 %v1165_v53, %v1165_v53  ;;  %v1261_v8 = vadd.f32 %v1260_v25, %v1259_v19  ;;  %v1224_v60 = vmul.f32 %v1168_v34, %v1168_v34  ;;  %v1282_v39 = vadd.f32 %v1219_v36, %v1218_v47 }
 0x22b   : > { %v1169_v12 = vsub.f32 %v2193_v18, %v2329_v37  ;;  %v1276_v0 = vadd.f32 %v1275_v52, %v1215_v48  ;;  %v1170_v28 = vsub.f32 %v2200_v23, %v2329_v37  ;;  %v1171_v46 = vsub.f32 %v2202_v24, %v2329_v37 }
 0x22c   : > { %v1172_v43 = vsub.f32 %v2210_v29, %v2329_v37  ;;  %1262 = vadd.xlane.f32.xlu1 %v1261_v8  ;;  %v1278_v22 = vsel %vm942_vm1, %v1217_v63, 0.0  ;;  %v1222_v14 = vmul.f32 %v1166_v55, %v1166_v55  ;;  %v1283_v25 = vadd.f32 %v1282_v39, %v1220_v10  ;;  %v2692_v8 = vld [vmem:[#allocation26_spill] sm:$0xff] }
 0x22d   : > { %v1173_v26 = vsub.f32 %v2227_v57, %v2329_v37  ;;  %v1277_v40 = vadd.f32 %v1276_v0, %v1216_v38  ;;  %v1174_v48 = vsub.f32 %v2251_v30, %v2329_v37  ;;  %v1225_v1 = vmul.f32 %v1169_v12, %v1169_v12 }
 0x22e   : > { %v1226_v53 = vmul.f32 %v1170_v28, %v1170_v28  ;;  %v1223_v2 = vmul.f32 %v1167_v61, %v1167_v61  ;;  %v1284_v34 = vadd.f32 %v1283_v25, %v1221_v21  ;;  %v1175_v19 = vsub.f32 %v2242_v13, %v2329_v37  ;;  %v2693_v28 = vld [vmem:[#allocation27_spill] sm:$0xff] }
 0x22f   : > { %v1227_v47 = vmul.f32 %v1171_v46, %v1171_v46  ;;  %v1279_v36 = vadd.f32 %v1278_v22, %v1277_v40  ;;  %v1287_v63 = vsel %vm942_vm1, %v1224_v60, 0.0  ;;  %v1228_v55 = vmul.f32 %v1172_v43, %v1172_v43  ;;  %v2694_v22 = vld [vmem:[#allocation33_spill] sm:$0xff] }
 0x230   : > { %v1291_v10 = vadd.f32 %v1226_v53, %v1225_v1  ;;  %v1285_v52 = vadd.f32 %v1284_v34, %v1222_v14  ;;  %v1176_v38 = vsub.f32 %v2217_v42, %v2335_v33  ;;  %v1177_v39 = vsub.f32 %v2692_v8, %v2335_v33  ;;  %v2695_v1 = vld [vmem:[#allocation35_spill] sm:$0xff] }
 0x231   : > { %v1178_v61 = vsub.f32 %v2693_v28, %v2335_v33  ;;  %1280 = vadd.xlane.f32.xlu1 %v1279_v36  ;;  %v1229_v21 = vmul.f32 %v1173_v26, %v1173_v26  ;;  %v1230_v12 = vmul.f32 %v1174_v48, %v1174_v48  ;;  %v1179_v46 = vsub.f32 %v2234_v16, %v2335_v33  ;;  %v2696_v26 = vld [vmem:[#allocation36_spill] sm:$0xff] }
 0x232   : > { %v1292_v0 = vadd.f32 %v1291_v10, %v1227_v47  ;;  %v1286_v60 = vadd.f32 %v1285_v52, %v1223_v2  ;;  %v1231_v43 = vmul.f32 %v1175_v19, %v1175_v19  ;;  %v1180_v14 = vsub.f32 %v2694_v22, %v2335_v33  ;;  %v2697_v2 = vld [vmem:[#allocation30_spill] sm:$0xff]  ;;  %v2698_v52 = vld [vmem:[#allocation31_spill] sm:$0xff] }
 0x233   : > { %v1232_v25 = vmul.f32 %v1176_v38, %v1176_v38  ;;  %v1182_v53 = vsub.f32 %v2695_v1, %v2335_v33  ;;  %v1233_v34 = vmul.f32 %v1177_v39, %v1177_v39  ;;  %v1234_v8 = vmul.f32 %v1178_v61, %v1178_v61  ;;  %v2699_v38 = vld [vmem:[#allocation32_spill] sm:$0xff] }
 0x234   : > { %v1293_v40 = vadd.f32 %v1292_v0, %v1228_v55  ;;  %v1288_v28 = vadd.f32 %v1287_v63, %v1286_v60  ;;  %v1181_v48 = vsub.f32 %v2696_v26, %v2335_v33  ;;  %v1235_v47 = vmul.f32 %v1179_v46, %v1179_v46  ;;  %v2700_v63 = vld [vmem:[#allocation34_spill] sm:$0xff] }
 0x235   : > { %v1300_v10 = vadd.f32 %v1233_v34, %v1232_v25  ;;  %v1183_v19 = vsub.f32 %v2697_v2, %v2348_v31  ;;  %v1184_v22 = vsub.f32 %v2698_v52, %v2348_v31  ;;  %v1296_v55 = vsel %vm942_vm1, %v1231_v43, 0.0  ;;  %v2701_v25 = vld [vmem:[#allocation37_spill] sm:$0xff]  ;;  %v2702_v43 = vld [vmem:[#allocation38_spill] sm:$0xff] }
 0x236   : > { %v1294_v36 = vadd.f32 %v1293_v40, %v1229_v21  ;;  %1289 = vadd.xlane.f32.xlu0 %v1288_v28  ;;  %v1185_v39 = vsub.f32 %v2699_v38, %v2348_v31  ;;  %v1186_v61 = vsub.f32 %v2700_v63, %v2348_v31  ;;  %v1236_v60 = vmul.f32 %v1180_v14, %v1180_v14 }
 0x237   : > { %v1238_v46 = vmul.f32 %v1182_v53, %v1182_v53  ;;  %v1301_v21 = vadd.f32 %v1300_v10, %v1234_v8  ;;  %v1187_v40 = vsub.f32 %v2701_v25, %v2348_v31  ;;  %v1239_v34 = vmul.f32 %v1183_v19, %v1183_v19 }
 0x238   : > { %v1295_v0 = vadd.f32 %v1294_v36, %v1230_v12  ;;  %v1240_v1 = vmul.f32 %v1184_v22, %v1184_v22  ;;  %v1241_v26 = vmul.f32 %v1185_v39, %v1185_v39  ;;  %v1237_v28 = vmul.f32 %v1181_v48, %v1181_v48 }
 0x239   : > { %v1302_v42 = vadd.f32 %v1301_v21, %v1235_v47  ;;  %v1189_v56 = vsub.f32 %v2702_v43, %v2348_v31  ;;  %v1188_v17 = vsub.f32 %v2703_v27, %v2348_v31  ;;  %v1242_v11 = vmul.f32 %v1186_v61, %v1186_v61 }
 0x23a   : > { %v1297_v16 = vadd.f32 %v1296_v55, %v1295_v0  ;;  %v1309_v12 = vadd.f32 %v1240_v1, %v1239_v34  ;;  %v1305_v8 = vsel %vm942_vm1, %v1238_v46, 0.0  ;;  %v1243_v53 = vmul.f32 %v1187_v40, %v1187_v40  ;;  %v1326_v40 = vld [vmem:[%s2609_s2] sm:$0xff] }
 0x23b   : > { %v1303_v14 = vadd.f32 %v1302_v42, %v1236_v60  ;;  %v1245_v22 = vmul.f32 %v1189_v56, %v1189_v56  ;;  %v1244_v19 = vmul.f32 %v1188_v17, %v1188_v17  ;;  %v1866_v61 = vmov 0  }
 0x23c   : > { %1298 = vadd.xlane.f32.xlu1 %v1297_v16  ;;  %v1310_v36 = vadd.f32 %v1309_v12, %v1241_v26  ;;  %1792 = vset.pattern.permute.xlu0 %v1866_v61 }
 0x23d   : > { %v1304_v10 = vadd.f32 %v1303_v14, %v1237_v28  ;;  %v1314_v39 = vsel %vm942_vm1, %v1245_v22, 0.0  ;;  %1793 = vset.pattern.permute.xlu1 %v1866_v61  ;;  %v1327_v22 = vld [vmem:[%s2609_s2 + $0x8] sm:$0xff] }
 0x23e   : > { %v1311_v55 = vadd.f32 %v1310_v36, %v1242_v11 }
 0x23f   : > { %v1306_v48 = vadd.f32 %v1305_v8, %v1304_v10 }
 0x240   : > { %v1312_v47 = vadd.f32 %v1311_v55, %v1243_v53 }
 0x241   : > { %1307 = vadd.xlane.f32.xlu0 %v1306_v48 }
 0x242   : > { %v1313_v0 = vadd.f32 %v1312_v47, %v1244_v19 }
 0x244   : > { %v1315_v21 = vadd.f32 %v1314_v39, %v1313_v0  ;;  %v1359_v0 = vld [vmem:[%s2610_s3 + $0x8] sm:$0xff] }
 0x246   : > { %1316 = vadd.xlane.f32.xlu1 %v1315_v21  ;;  %v1328_v21 = vld [vmem:[%s2609_s2 + $0x10] sm:$0xff] }
 0x2b1   : > { %v1254_v42 = vpop.xlane.xlu0 %1253 }
 0x2b2   : > { %v1318_v16 = vmul.f32 0.0012755102, %v1254_v42 }
 0x2b4   : > { %v1334_v1 = vadd.f32 1e-05, %v1318_v16  ;;  %v1329_v16 = vld [vmem:[%s2609_s2 + $0x18] sm:$0xff] }
 0x2b5   : > { %v1272_v26 = vpop.xlane.xlu0 %1271 }
 0x2b6   : > { %1794 = vrsqrt.f32 %v1334_v1  ;;  %v1320_v60 = vmul.f32 0.0012755102, %v1272_v26 }
 0x2b8   : > { %v1336_v46 = vadd.f32 1e-05, %v1320_v60 }
 0x2b9   : > { %v1263_v56 = vpop.xlane.xlu1 %1262 }
 0x2ba   : > { %v1319_v17 = vmul.f32 0.0012755102, %v1263_v56 }
 0x2bc   : > { %v1335_v11 = vadd.f32 1e-05, %v1319_v17 }
 0x2be   : > { %1796 = vrsqrt.f32 %v1335_v11  ;;  %v1281_v34 = vpop.xlane.xlu1 %1280 }
 0x2bf   : > { %v1321_v12 = vmul.f32 0.0012755102, %v1281_v34  ;;  %1798 = vrsqrt.f32 %v1336_v46  ;;  %v1361_v46 = vld [vmem:[%s2610_s3 + $0x18] sm:$0xff] }
 0x2c0   : > { %v1795_v28 = vpop.eup %1794 }
 0x2c1   : > { %v1350_v14 = vmul.f32 %v1795_v28, %v1326_v40  ;;  %v1337_v8 = vadd.f32 1e-05, %v1321_v12  ;;  %v1330_v12 = vld [vmem:[%s2609_s2 + $0x20] sm:$0xff] }
 0x2c3   : > { %1384 = vperm.xlu0 %1792, %v1350_v14   ;;  %1800 = vrsqrt.f32 %v1337_v8  ;;  %v1290_v53 = vpop.xlane.xlu0 %1289 }
 0x2c4   : > { %v1322_v36 = vmul.f32 0.0012755102, %v1290_v53 }
 0x2c6   : > { %v1338_v10 = vadd.f32 1e-05, %v1322_v36  ;;  %v1331_v36 = vld [vmem:[%s2609_s2 + $0x28] sm:$0xff] }
 0x2c8   : > { %v1797_v19 = vpop.eup %1796  ;;  %1802 = vrsqrt.f32 %v1338_v10 }
 0x2c9   : > { %v1299_v55 = vpop.xlane.xlu1 %1298  ;;  %v1351_v47 = vmul.f32 %v1797_v19, %v1327_v22  ;;  %v1799_v39 = vpop.eup %1798 }
 0x2ca   : > { %v1323_v48 = vmul.f32 0.0012755102, %v1299_v55  ;;  %v1352_v60 = vmul.f32 %v1799_v39, %v1328_v21  ;;  %v1363_v55 = vld [vmem:[%s2610_s3 + $0x28] sm:$0xff] }
 0x2cb   : > { %1389 = vperm.xlu1 %1793, %v1351_v47   ;;  %v1367_v42 = vmul.f32 %v1351_v47, %v2316_v44  ;;  %v1332_v47 = vld [vmem:[%s2609_s2 + $0x30] sm:$0xff] }
 0x2cc   : > { %v1339_v61 = vadd.f32 1e-05, %v1323_v48 }
 0x2cd   : > { %v1801_v1 = vpop.eup %1800  ;;  %v1375_v26 = vsub.f32 %v1359_v0, %v1367_v42 }
 0x2ce   : > { %1804 = vrsqrt.f32 %v1339_v61  ;;  %v1308_v56 = vpop.xlane.xlu0 %1307  ;;  %v1353_v17 = vmul.f32 %v1801_v1, %v1329_v16  ;;  %v1333_v61 = vld [vmem:[%s2609_s2 + $0x38] sm:$0xff]  ;;  %v2704_v1 = vld [vmem:[#allocation40_spill] sm:$0xff] }
 0x2cf   : > { %v1324_v11 = vmul.f32 0.0012755102, %v1308_v56  ;;  %1485 = vperm.xlu0 %1792, %v1375_v26   ;;  %1394 = vperm.xlu1 %1793, %v1352_v60   ;;  %v1366_v26 = vmul.f32 %v1350_v14, %v2704_v1  ;;  %v1358_v56 = vld [vmem:[%s2610_s3] sm:$0xff] }
 0x2d0   : > { %v1369_v40 = vmul.f32 %v1353_v17, %v2314_v32 }
 0x2d1   : > { %v1340_v44 = vadd.f32 1e-05, %v1324_v11 }
 0x2d2   : > { %v1803_v34 = vpop.eup %1802  ;;  %v1377_v28 = vsub.f32 %v1361_v46, %v1369_v40  ;;  %v1374_v46 = vsub.f32 %v1358_v56, %v1366_v26  ;;  %v1368_v40 = vmul.f32 %v1352_v60, %v2282_v35  ;;  %v1364_v35 = vld [vmem:[%s2610_s3 + $0x30] sm:$0xff] }
 0x2d3   : > { %1806 = vrsqrt.f32 %v1340_v44  ;;  %v1317_v8 = vpop.xlane.xlu1 %1316  ;;  %1399 = vperm.xlu1 %1793, %v1353_v17   ;;  %v1354_v10 = vmul.f32 %v1803_v34, %v1330_v12  ;;  %v1360_v44 = vld [vmem:[%s2610_s3 + $0x10] sm:$0xff] }
 0x2d4   : > { %v1325_v53 = vmul.f32 0.0012755102, %v1317_v8  ;;  %1495 = vperm.xlu0 %1792, %v1377_v28   ;;  %v1376_v14 = vsub.f32 %v1360_v44, %v1368_v40  ;;  %v1362_v28 = vld [vmem:[%s2610_s3 + $0x20] sm:$0xff] }
 0x2d5   : > { %v1370_v34 = vmul.f32 %v1354_v10, %v2327_v41 }
 0x2d6   : > { %v1341_v22 = vadd.f32 1e-05, %v1325_v53 }
 0x2d7   : > { %1404 = vperm.xlu1 %1793, %v1354_v10  }
 0x2d8   : > { %v1805_v19 = vpop.eup %1804  ;;  %1808 = vrsqrt.f32 %v1341_v22 }
 0x2d9   : > { %v1355_v32 = vmul.f32 %v1805_v19, %v1331_v36 }
 0x2db   : > { %v1371_v48 = vmul.f32 %v1355_v32, %v2329_v37  ;;  %1409 = vperm.xlu1 %1793, %v1355_v32   ;;  %v1365_v37 = vld [vmem:[%s2610_s3 + $0x38] sm:$0xff] }
 0x2dd   : > { %v1379_v39 = vsub.f32 %v1363_v55, %v1371_v48  ;;  %v1807_v0 = vpop.eup %1806 }
 0x2de   : > { %v1356_v21 = vmul.f32 %v1807_v0, %v1332_v47 }
 0x2df   : > { %1505 = vperm.xlu0 %1792, %v1379_v39  }
 0x2e0   : > { %1414 = vperm.xlu1 %1793, %v1356_v21   ;;  %v1372_v12 = vmul.f32 %v1356_v21, %v2335_v33 }
 0x2e2   : > { %v1809_v42 = vpop.eup %1808  ;;  %v1380_v60 = vsub.f32 %v1364_v35, %v1372_v12 }
 0x2e3   : > { %v1357_v16 = vmul.f32 %v1809_v42, %v1333_v61 }
 0x2e5   : > { %v1373_v17 = vmul.f32 %v1357_v16, %v2348_v31  ;;  %1419 = vperm.xlu1 %1793, %v1357_v16   ;;  %v1378_v31 = vsub.f32 %v1362_v28, %v1370_v34 }
 0x2e7   : > { %v1381_v11 = vsub.f32 %v1365_v37, %v1373_v17 }
 0x2e9   : > { %1515 = vperm.xlu0 %1792, %v1381_v11   ;;  %1480 = vperm.xlu1 %1793, %v1374_v46  }
 0x2ed   : > { %1490 = vperm.xlu1 %1793, %v1376_v14  }
 0x2f1   : > { %1500 = vperm.xlu1 %1793, %v1378_v31  }
 0x2f5   : > { %1510 = vperm.xlu1 %1793, %v1380_v60  }
 0x342   : > { %v2474_v8 = vpop.permute.xlu0 %1384 }
 0x34a   : > { %v1390_v53 = vpop.permute.xlu1 %1389 }
 0x34b   : > { %v1429_v41 = vmul.f32 %v1390_v53, %v2151_v58  ;;  %v1430_v22 = vmul.f32 %v1390_v53, %v2153_v49  ;;  %v1431_v19 = vmul.f32 %v1390_v53, %v2155_v59  ;;  %v1432_v33 = vmul.f32 %v1390_v53, %v2170_v4 }
 0x34c   : > { %v1433_v32 = vmul.f32 %v1390_v53, %v2181_v9  ;;  %v1434_v55 = vmul.f32 %v1390_v53, %v2189_v15  ;;  %v1435_v48 = vmul.f32 %v1390_v53, %v2196_v20 }
 0x34e   : > { %v2477_v36 = vpop.permute.xlu1 %1394  ;;  %v1486_v10 = vpop.permute.xlu0 %1485 }
 0x34f   : > { %v1525_v47 = vadd.f32 %v1486_v10, %v1429_v41  ;;  %v1526_v39 = vadd.f32 %v1486_v10, %v1430_v22  ;;  %v1527_v0 = vadd.f32 %v1486_v10, %v1431_v19  ;;  %v1528_v21 = vadd.f32 %v1486_v10, %v1432_v33 }
 0x350   : > { %v1529_v58 = vadd.f32 %v1486_v10, %v1433_v32  ;;  %v1530_v61 = vadd.f32 %v1486_v10, %v1434_v55  ;;  %v1531_v42 = vadd.f32 %v1486_v10, %v1435_v48  ;;  %v2708_v48 = vld [vmem:[#allocation16_spill] sm:$0xff] }
 0x351   : > { %1581 = vst [vmem:[#allocation4 + $0x38] sm:$0xff] %v1525_v47  ;;  %1582 = vst [vmem:[#allocation4 + $0x40] sm:$0xff] %v1526_v39  ;;  %v1425_v47 = vmul.f32 %v2474_v8, %v2708_v48 }
 0x352   : > { %v1400_v16 = vpop.permute.xlu1 %1399  ;;  %1583 = vst [vmem:[#allocation4 + $0x48] sm:$0xff] %v1527_v0  ;;  %1584 = vst [vmem:[#allocation4 + $0x50] sm:$0xff] %v1528_v21 }
 0x353   : > { %1585 = vst [vmem:[#allocation4 + $0x58] sm:$0xff] %v1529_v58  ;;  %v1443_v49 = vmul.f32 %v1400_v16, %v2131_v45  ;;  %v1444_v59 = vmul.f32 %v1400_v16, %v2137_v50  ;;  %v1445_v4 = vmul.f32 %v1400_v16, %v2139_v51  ;;  %v1446_v9 = vmul.f32 %v1400_v16, %v2145_v54  ;;  %v1496_v26 = vpop.permute.xlu0 %1495  ;;  %v2709_v58 = vld [vmem:[#allocation18_spill] sm:$0xff] }
 0x354   : > { %1586 = vst [vmem:[#allocation4 + $0x60] sm:$0xff] %v1530_v61  ;;  %1587 = vst.msk [vmem:[#allocation4 + $0x68] sm:$0xff] %vm942_vm1, %v1531_v42  ;;  %v1447_v15 = vmul.f32 %v1400_v16, %v2161_v62  ;;  %v1448_v20 = vmul.f32 %v1400_v16, %v2168_v3  ;;  %v1449_v1 = vmul.f32 %v1400_v16, %v2178_v7  ;;  %v2710_v42 = vld [vmem:[#allocation20_spill] sm:$0xff]  ;;  %v2712_v16 = vld [vmem:[#allocation7_spill] sm:$0xff] }
 0x355   : > { %v1539_v37 = vadd.f32 %v1496_v26, %v1443_v49  ;;  %v1540_v56 = vadd.f32 %v1496_v26, %v1444_v59  ;;  %v1541_v17 = vadd.f32 %v1496_v26, %v1445_v4  ;;  %v1542_v45 = vadd.f32 %v1496_v26, %v1446_v9  ;;  %v2713_v49 = vld [vmem:[#allocation8_spill] sm:$0xff]  ;;  %v2715_v4 = vld [vmem:[#allocation10_spill] sm:$0xff]  ;;  %v2716_v9 = vld [vmem:[#allocation13_spill] sm:$0xff] }
 0x356   : > { %v1543_v11 = vadd.f32 %v1496_v26, %v1447_v15  ;;  %v1544_v50 = vadd.f32 %v1496_v26, %v1448_v20  ;;  %v1545_v46 = vadd.f32 %v1496_v26, %v1449_v1  ;;  %v2493_v51 = vpop.permute.xlu1 %1404  ;;  %v1426_v61 = vmul.f32 %v2474_v8, %v2709_v58 }
 0x357   : > { %1595 = vst [vmem:[#allocation4 + $0xa8] sm:$0xff] %v1539_v37  ;;  %1596 = vst [vmem:[#allocation4 + $0xb0] sm:$0xff] %v1540_v56  ;;  %v1437_v59 = vmul.f32 %v2477_v36, %v2713_v49  ;;  %v1440_v15 = vmul.f32 %v2477_v36, %v2716_v9 }
 0x358   : > { %1597 = vst [vmem:[#allocation4 + $0xb8] sm:$0xff] %v1541_v17  ;;  %1598 = vst [vmem:[#allocation4 + $0xc0] sm:$0xff] %v1542_v45 }
 0x359   : > { %1599 = vst [vmem:[#allocation4 + $0xc8] sm:$0xff] %v1543_v11  ;;  %1600 = vst [vmem:[#allocation4 + $0xd0] sm:$0xff] %v1544_v50 }
 0x35a   : > { %1601 = vst.msk [vmem:[#allocation4 + $0xd8] sm:$0xff] %vm942_vm1, %v1545_v46  ;;  %v1410_v54 = vpop.permute.xlu1 %1409 }
 0x35b   : > { %v1457_v62 = vmul.f32 %v1410_v54, %v2193_v18  ;;  %v1458_v3 = vmul.f32 %v1410_v54, %v2200_v23  ;;  %v1459_v7 = vmul.f32 %v1410_v54, %v2202_v24  ;;  %v1460_v40 = vmul.f32 %v1410_v54, %v2210_v29  ;;  %v2705_v23 = vld [vmem:[#allocation11_spill] sm:$0xff]  ;;  %v2706_v29 = vld [vmem:[#allocation12_spill] sm:$0xff] }
 0x35c   : > { %v1461_v44 = vmul.f32 %v1410_v54, %v2227_v57  ;;  %v1462_v14 = vmul.f32 %v1410_v54, %v2251_v30  ;;  %v1463_v34 = vmul.f32 %v1410_v54, %v2242_v13  ;;  %v1422_v24 = vmul.f32 %v2474_v8, %v2705_v23  ;;  %v2707_v13 = vld [vmem:[#allocation14_spill] sm:$0xff] }
 0x35d   : > { %v1423_v57 = vmul.f32 %v2474_v8, %v2706_v29  ;;  %v1424_v30 = vmul.f32 %v2474_v8, %v2707_v13  ;;  %v1450_v23 = vmul.f32 %v2493_v51, %v2172_v5  ;;  %v2719_v29 = vld [vmem:[#allocation21_spill] sm:$0xff]  ;;  %v2720_v13 = vld [vmem:[#allocation22_spill] sm:$0xff]  ;;  %v2723_v5 = vld [vmem:[#allocation24_spill] sm:$0xff] }
 0x35e   : > { %v1506_v28 = vpop.permute.xlu0 %1505 }
 0x35f   : > { %v1553_v31 = vadd.f32 %v1506_v28, %v1457_v62  ;;  %v1554_v12 = vadd.f32 %v1506_v28, %v1458_v3  ;;  %v1555_v35 = vadd.f32 %v1506_v28, %v1459_v7  ;;  %v1556_v60 = vadd.f32 %v1506_v28, %v1460_v40  ;;  %v2503_v10 = vpop.permute.xlu1 %1414  ;;  %v2717_v7 = vld [vmem:[#allocation15_spill] sm:$0xff] }
 0x360   : > { %v1557_v53 = vadd.f32 %v1506_v28, %v1461_v44  ;;  %v1558_v41 = vadd.f32 %v1506_v28, %v1462_v14  ;;  %v1559_v18 = vadd.f32 %v1506_v28, %v1463_v34  ;;  %v1441_v40 = vmul.f32 %v2477_v36, %v2717_v7  ;;  %v2718_v44 = vld [vmem:[#allocation17_spill] sm:$0xff] }
 0x361   : > { %1609 = vst [vmem:[#allocation4 + $0x118] sm:$0xff] %v1553_v31  ;;  %1610 = vst [vmem:[#allocation4 + $0x120] sm:$0xff] %v1554_v12  ;;  %v1442_v14 = vmul.f32 %v2477_v36, %v2718_v44 }
 0x362   : > { %1611 = vst [vmem:[#allocation4 + $0x128] sm:$0xff] %v1555_v35  ;;  %1612 = vst [vmem:[#allocation4 + $0x130] sm:$0xff] %v1556_v60 }
 0x363   : > { %1613 = vst [vmem:[#allocation4 + $0x138] sm:$0xff] %v1557_v53  ;;  %1614 = vst [vmem:[#allocation4 + $0x140] sm:$0xff] %v1558_v41 }
 0x364   : > { %1615 = vst.msk [vmem:[#allocation4 + $0x148] sm:$0xff] %vm942_vm1, %v1559_v18  ;;  %v1420_v22 = vpop.permute.xlu1 %1419 }
 0x365   : > { %v1471_v19 = vmul.f32 %v1420_v22, %v2697_v2  ;;  %v1472_v33 = vmul.f32 %v1420_v22, %v2698_v52  ;;  %v1473_v32 = vmul.f32 %v1420_v22, %v2699_v38  ;;  %v1474_v55 = vmul.f32 %v1420_v22, %v2700_v63  ;;  %v2711_v52 = vld [vmem:[#allocation19_spill] sm:$0xff] }
 0x366   : > { %v1475_v39 = vmul.f32 %v1420_v22, %v2701_v25  ;;  %v1476_v0 = vmul.f32 %v1420_v22, %v2703_v27  ;;  %v1477_v21 = vmul.f32 %v1420_v22, %v2702_v43  ;;  %v1427_v2 = vmul.f32 %v2474_v8, %v2710_v42  ;;  %v2714_v25 = vld [vmem:[#allocation9_spill] sm:$0xff]  ;;  %v2721_v22 = vld [vmem:[#allocation23_spill] sm:$0xff] }
 0x367   : > { %v1428_v38 = vmul.f32 %v2474_v8, %v2711_v52  ;;  %v1436_v63 = vmul.f32 %v2477_v36, %v2712_v16  ;;  %v1438_v27 = vmul.f32 %v2477_v36, %v2714_v25  ;;  %v1439_v43 = vmul.f32 %v2477_v36, %v2715_v4  ;;  %v2724_v42 = vld [vmem:[#allocation25_spill] sm:$0xff] }
 0x368   : > { %v1516_v20 = vpop.permute.xlu0 %1515  ;;  %v1481_v1 = vpop.permute.xlu1 %1480 }
 0x369   : > { %v1567_v26 = vadd.f32 %v1516_v20, %v1471_v19  ;;  %v1568_v37 = vadd.f32 %v1516_v20, %v1472_v33  ;;  %v1569_v8 = vadd.f32 %v1516_v20, %v1473_v32  ;;  %v1570_v56 = vadd.f32 %v1516_v20, %v1474_v55  ;;  %v2722_v33 = vld [vmem:[#allocation28_spill] sm:$0xff] }
 0x36a   : > { %v1571_v17 = vadd.f32 %v1516_v20, %v1475_v39  ;;  %v1572_v45 = vadd.f32 %v1516_v20, %v1476_v0  ;;  %v1573_v11 = vadd.f32 %v1516_v20, %v1477_v21  ;;  %v1518_v50 = vadd.f32 %v1481_v1, %v1422_v24 }
 0x36b   : > { %1623 = vst [vmem:[#allocation4 + $0x188] sm:$0xff] %v1567_v26  ;;  %1624 = vst [vmem:[#allocation4 + $0x190] sm:$0xff] %v1568_v37  ;;  %v1519_v46 = vadd.f32 %v1481_v1, %v1423_v57  ;;  %v1520_v54 = vadd.f32 %v1481_v1, %v1424_v30  ;;  %v1521_v62 = vadd.f32 %v1481_v1, %v1425_v47 }
 0x36c   : > { %1625 = vst [vmem:[#allocation4 + $0x198] sm:$0xff] %v1569_v8  ;;  %1626 = vst [vmem:[#allocation4 + $0x1a0] sm:$0xff] %v1570_v56  ;;  %v1522_v3 = vadd.f32 %v1481_v1, %v1426_v61  ;;  %v1523_v34 = vadd.f32 %v1481_v1, %v1427_v2  ;;  %v1524_v28 = vadd.f32 %v1481_v1, %v1428_v38  ;;  %v1491_v31 = vpop.permute.xlu1 %1490  ;;  %v2726_v38 = vld [vmem:[#allocation27_spill] sm:$0xff] }
 0x36d   : > { %1627 = vst [vmem:[#allocation4 + $0x1a8] sm:$0xff] %v1571_v17  ;;  %1628 = vst [vmem:[#allocation4 + $0x1b0] sm:$0xff] %v1572_v45  ;;  %v1532_v12 = vadd.f32 %v1491_v31, %v1436_v63  ;;  %v1533_v35 = vadd.f32 %v1491_v31, %v1437_v59  ;;  %v1534_v60 = vadd.f32 %v1491_v31, %v1438_v27  ;;  %v2727_v63 = vld [vmem:[#allocation29_spill] sm:$0xff]  ;;  %v2729_v27 = vld [vmem:[#allocation36_spill] sm:$0xff] }
 0x36e   : > { %1629 = vst.msk [vmem:[#allocation4 + $0x1b8] sm:$0xff] %vm942_vm1, %v1573_v11  ;;  %1574 = vst [vmem:[#allocation4] sm:$0xff] %v1518_v50  ;;  %v1535_v53 = vadd.f32 %v1491_v31, %v1439_v43  ;;  %v1536_v36 = vadd.f32 %v1491_v31, %v1440_v15  ;;  %v1537_v41 = vadd.f32 %v1491_v31, %v1441_v40  ;;  %v2728_v59 = vld [vmem:[#allocation33_spill] sm:$0xff]  ;;  %v2730_v43 = vld [vmem:[#allocation35_spill] sm:$0xff] }
 0x36f   : > { %1575 = vst [vmem:[#allocation4 + $0x8] sm:$0xff] %v1519_v46  ;;  %1576 = vst [vmem:[#allocation4 + $0x10] sm:$0xff] %v1520_v54  ;;  %v1538_v18 = vadd.f32 %v1491_v31, %v1442_v14  ;;  %v1451_v24 = vmul.f32 %v2493_v51, %v2174_v6  ;;  %v1452_v57 = vmul.f32 %v2493_v51, %v2719_v29 }
 0x370   : > { %1577 = vst [vmem:[#allocation4 + $0x18] sm:$0xff] %v1521_v62  ;;  %1578 = vst [vmem:[#allocation4 + $0x20] sm:$0xff] %v1522_v3  ;;  %v1453_v30 = vmul.f32 %v2493_v51, %v2720_v13  ;;  %v1454_v19 = vmul.f32 %v2493_v51, %v2721_v22  ;;  %v1455_v32 = vmul.f32 %v2493_v51, %v2722_v33  ;;  %v1501_v6 = vpop.permute.xlu1 %1500 }
 0x371   : > { %1579 = vst [vmem:[#allocation4 + $0x28] sm:$0xff] %v1523_v34  ;;  %1580 = vst.msk [vmem:[#allocation4 + $0x30] sm:$0xff] %vm942_vm1, %v1524_v28  ;;  %v1456_v55 = vmul.f32 %v2493_v51, %v2723_v5  ;;  %v1546_v48 = vadd.f32 %v1501_v6, %v1450_v23  ;;  %v1547_v47 = vadd.f32 %v1501_v6, %v1451_v24  ;;  %v2725_v51 = vld [vmem:[#allocation26_spill] sm:$0xff] }
 0x372   : > { %1588 = vst [vmem:[#allocation4 + $0x70] sm:$0xff] %v1532_v12  ;;  %1589 = vst [vmem:[#allocation4 + $0x78] sm:$0xff] %v1533_v35  ;;  %v1548_v39 = vadd.f32 %v1501_v6, %v1452_v57  ;;  %v1549_v0 = vadd.f32 %v1501_v6, %v1453_v30  ;;  %v1550_v21 = vadd.f32 %v1501_v6, %v1454_v19 }
 0x373   : > { %1590 = vst [vmem:[#allocation4 + $0x80] sm:$0xff] %v1534_v60  ;;  %1591 = vst [vmem:[#allocation4 + $0x88] sm:$0xff] %v1535_v53  ;;  %v1551_v58 = vadd.f32 %v1501_v6, %v1455_v32  ;;  %v1552_v61 = vadd.f32 %v1501_v6, %v1456_v55  ;;  %v1464_v2 = vmul.f32 %v2503_v10, %v2724_v42 }
 0x374   : > { %1592 = vst [vmem:[#allocation4 + $0x90] sm:$0xff] %v1536_v36  ;;  %1593 = vst [vmem:[#allocation4 + $0x98] sm:$0xff] %v1537_v41  ;;  %v1465_v52 = vmul.f32 %v2503_v10, %v2725_v51  ;;  %v1466_v16 = vmul.f32 %v2503_v10, %v2726_v38  ;;  %v1467_v49 = vmul.f32 %v2503_v10, %v2727_v63  ;;  %v1511_v15 = vpop.permute.xlu1 %1510 }
 0x375   : > { %1594 = vst.msk [vmem:[#allocation4 + $0xa0] sm:$0xff] %vm942_vm1, %v1538_v18  ;;  %1602 = vst [vmem:[#allocation4 + $0xe0] sm:$0xff] %v1546_v48  ;;  %v1468_v25 = vmul.f32 %v2503_v10, %v2728_v59  ;;  %v1469_v4 = vmul.f32 %v2503_v10, %v2729_v27  ;;  %v1470_v9 = vmul.f32 %v2503_v10, %v2730_v43 }
 0x376   : > { %1603 = vst [vmem:[#allocation4 + $0xe8] sm:$0xff] %v1547_v47  ;;  %1604 = vst [vmem:[#allocation4 + $0xf0] sm:$0xff] %v1548_v39  ;;  %v1560_v20 = vadd.f32 %v1511_v15, %v1464_v2  ;;  %v1561_v1 = vadd.f32 %v1511_v15, %v1465_v52  ;;  %v1562_v26 = vadd.f32 %v1511_v15, %v1466_v16 }
 0x377   : > { %1605 = vst [vmem:[#allocation4 + $0xf8] sm:$0xff] %v1549_v0  ;;  %1606 = vst [vmem:[#allocation4 + $0x100] sm:$0xff] %v1550_v21  ;;  %v1563_v37 = vadd.f32 %v1511_v15, %v1467_v49  ;;  %v1564_v8 = vadd.f32 %v1511_v15, %v1468_v25  ;;  %v1565_v56 = vadd.f32 %v1511_v15, %v1469_v4 }
 0x378   : > { %1607 = vst [vmem:[#allocation4 + $0x108] sm:$0xff] %v1551_v58  ;;  %1608 = vst.msk [vmem:[#allocation4 + $0x110] sm:$0xff] %vm942_vm1, %v1552_v61  ;;  %v1566_v17 = vadd.f32 %v1511_v15, %v1470_v9 }
 0x379   : > { %1616 = vst [vmem:[#allocation4 + $0x150] sm:$0xff] %v1560_v20  ;;  %1617 = vst [vmem:[#allocation4 + $0x158] sm:$0xff] %v1561_v1 }
 0x37a   : > { %1618 = vst [vmem:[#allocation4 + $0x160] sm:$0xff] %v1562_v26  ;;  %1619 = vst [vmem:[#allocation4 + $0x168] sm:$0xff] %v1563_v37 }
 0x37b   : > { %1620 = vst [vmem:[#allocation4 + $0x170] sm:$0xff] %v1564_v8  ;;  %1621 = vst [vmem:[#allocation4 + $0x178] sm:$0xff] %v1565_v56 }
 0x37c   : > { %1622 = vst.msk [vmem:[#allocation4 + $0x180] sm:$0xff] %vm942_vm1, %v1566_v17 }
 0x37d PF: > { %p1756_p11 = scmp.eq.s32.totalorder %s1911_s18, 2  ;;  %s1867_s26 = smov [#allocation4]  }
 0x37e   : > { %s1636_s27 = sshll.u32 %s1867_s26, 4  ;;  %s1637_s27 = int_to_ptr.vmem [resolvable:$true] %s1636_s27 }
 0x37f   : > { %s1810_s28 = scalar_lea.vmem %s1637_s27, 7168  ;;  %p1817_p1 = scmp.lt.s32.totalorder %s1637_s27, %s1637_s27 }
 0x380   : > { %p1811_p12 = scmp.ne.s32.totalorder %s1637_s27, %s1810_s28  ;;  %p1818_p2 = scmp.lt.s32.totalorder %s1810_s28, %s1810_s28 }
 0x382   : > { %p1812_p13 = pnand %p1811_p12, %p1756_p11  ;;  %p1819_p3 = por %p1818_p2, %p1817_p1 }
 0x384   : > { %p1813_p0 = pneg %p1812_p13 }
 0x386   : > { %p1820_p4 = pnand %p1819_p3, %p1813_p0 }
 0x388   : > { %1823 = shalt.err (!%p1820_p4)
}
 0x389   : > { %s1824_s5 = scalar_lea.hbm %s2611_s4, 7168 }
 0x38a   : > { %p1825_p5 = scmp.ne.s32.totalorder %s2611_s4, %s1824_s5  ;;  %p1830_p8 = scmp.lt.u32.totalorder %s1824_s5, %s2611_s4 }
 0x38c   : > { %p1826_p6 = pnand %p1825_p5, %p1756_p11 }
 0x38e   : > { %p1827_p7 = pneg %p1826_p6 }
 0x390   : > { %p1832_p9 = pnand %p1830_p8, %p1827_p7 }
 0x392   : > { %1835 = shalt.err (!%p1832_p9)
}
 0x393   : > { %s1868_s10 = smov 896   ;;  %s1869_s11 = smov 56  }
 0x394   : > { %1753 = dma.vmem_to_hbm [thread:$0]  (%p1756_p11), %s1637_s27, 7168, %s2611_s4, [#allocation5], %s1868_s10, %s1868_s10, %s1869_s11  }
 0x395   : > { %1849 = dma.done.wait (%p1756_p11), [#allocation5], 7168  }
 0x396   : > { %1851 = vsyncadd (%p1756_p11), [#allocation5], 4294960128 }
 0x397 PF: > { %p12_p10 = scmp.ge.s32.totalorder %s1914_s19, 5   ;;  %s2731_s15 = smov %s1858_s16 }
 0x398   : > { %s2732_s16 = smov %s1923_s22  ;;  %s2733_s17 = smov %s1914_s19 }
 0x399   :  { %14 = sbr.rel (!%p12_p10) target bundleno = 2 (0x2), region = 120 }
 0x3a0   :  { %1652 = vsyncpa [#allocation5], 1 }
 0x3a1   :  { %1654 = vsyncpa [#allocation5 + $0x1], 1 }

</bundles_post_ra>
